<compile_context>
chip_gen: v7x
topology: tpu7x:2x2x1
jax: 0.10.0
libtpu: 0.0.40
codegen_flags: <defaults>
</compile_context>

<pallas_src>
import functools
import math

import jax
import jax.numpy as jnp
from jax.experimental import pallas as pl
from jax.experimental.pallas import tpu as pltpu


MiB = 1024 * 1024


def _round_up(v, m):
    return (v + m - 1) // m * m


def _vmem_capacity_bytes():
    """Per-core VMEM capacity; conservative (v7x-safe) fallback if the query fails."""
    try:
        return int(pltpu.get_tpu_info().vmem_capacity_bytes)
    except Exception:
        return 64 * MiB


def _maybe_buffered_spec(block_shape, index_map, bufs):
    """BlockSpec with pipeline_mode=pl.Buffered(bufs) when supported and useful."""
    if bufs is not None and bufs != 2 and hasattr(pl, "Buffered"):
        try:
            return pl.BlockSpec(block_shape, index_map, pipeline_mode=pl.Buffered(bufs))
        except TypeError:
            pass
    return pl.BlockSpec(block_shape, index_map)


def ffn_kernel(x_ref, w1_ref, b1_ref, w2_ref, b2_ref, o_ref, acc_ref, *, approximate):
    # x_ref:  (tm, Hp)       token rows
    # w1_ref: (Hp, tf)       W1 slab along the ffn axis
    # b1_ref: (1, tf)
    # w2_ref: (tf, Hp)       matching W2 slab
    # b2_ref: (1, Hp)
    # o_ref:  (tm, Hp)       output tile (same block across the ffn axis)
    # acc_ref:(tm, Hp) f32   accumulator scratch
    f = pl.program_id(1)

    @pl.when(f == 0)
    def _():
        acc_ref[...] = jnp.zeros_like(acc_ref)

    # first linear (this ffn slab) + bias, in f32
    h = jnp.dot(x_ref[...], w1_ref[...], preferred_element_type=jnp.float32)
    h = h + b1_ref[...]

    if approximate:
        # tanh-approx GELU -> EUP (frees VALU slots); differs slightly from torch default
        h = jax.nn.gelu(h, approximate=True)
    else:
        # exact erf-based GELU, matching torch.nn.GELU() default
        h = 0.5 * h * (1.0 + jax.lax.erf(h * (1.0 / math.sqrt(2.0))))

    # second linear: accumulate partial products over ffn slabs
    acc_ref[...] += jnp.dot(h.astype(w2_ref.dtype), w2_ref[...],
                            preferred_element_type=jnp.float32)

    @pl.when(f == pl.num_programs(1) - 1)
    def _():
        # fold b2 into the finalize (one add per output tile, not per ffn slab)
        o_ref[...] = (acc_ref[...] + b2_ref[...]).astype(o_ref.dtype)


def feed_forward_network(x, w1, b1, w2, b2, *, tm=512, tf=1024,
                         approximate=False,
                         vmem_budget_bytes=None,
                         vmem_limit_bytes=None,
                         weight_buffering=None):
    """x: (batch, seq, hidden) -> (batch, seq, hidden).

    w1: (hidden, ffn), b1: (ffn,), w2: (ffn, hidden), b2: (hidden,)
    """
    B, S, H = x.shape
    F_ = w1.shape[1]
    M = B * S
    dtype = x.dtype
    itemsize = jnp.dtype(dtype).itemsize

    # ---- generation-aware VMEM budget -------------------------------------------------
    cap = _vmem_capacity_bytes()
    if vmem_budget_bytes is None:
        # working-set budget for the pipelined tiles (~70% of per-core VMEM, capped)
        vmem_budget_bytes = min(int(0.70 * cap), 96 * MiB)
    if vmem_limit_bytes is None:
        # compiler scoped-VMEM limit with headroom for Mosaic internal scratch
        vmem_limit_bytes = min(int(0.85 * cap), 112 * MiB)

    # ---- tile / padding geometry (256-aligned for the 2x256x256 MXUs) ------------------
    ALIGN = 256
    H_pad = _round_up(H, ALIGN)
    F_pad = _round_up(F_, ALIGN)

    tm = max(ALIGN, _round_up(min(tm, _round_up(M, ALIGN)), ALIGN))
    tf = max(ALIGN, _round_up(min(tf, F_pad), ALIGN))

    if weight_buffering is None:
        weight_buffering = 3 if cap >= 96 * MiB else 2
    wbuf = weight_buffering

    def vmem_bytes(tm_, tf_, wbuf_):
        xo = 2 * 2 * itemsize * tm_ * H_pad                         # x + out, double-buffered
        w = wbuf_ * itemsize * (H_pad * tf_ + tf_ + tf_ * H_pad)    # W1 slab + b1 slab + W2 slab
        b2b = 2 * itemsize * H_pad                                  # b2
        acc = 4 * tm_ * H_pad                                       # f32 accumulator scratch
        # (tm, tf) f32 GELU intermediate (+ cast copy for sub-f32 dtypes): Mosaic
        # materializes it in internal VMEM scratch, so budget for it explicitly.
        h_im = 4 * tm_ * tf_ + (itemsize * tm_ * tf_ if itemsize < 4 else 0)
        return xo + w + b2b + acc + h_im

    # Shrink order (per perf review): tf down to 512, then weight buffering to 2, then
    # tm down to 256, then tf down to 256, and only as a last resort tm down to 128.
    # tm never drops to the sublane pack (which would waste most of the MXU and multiply
    # weight HBM traffic).
    while vmem_bytes(tm, tf, wbuf) > vmem_budget_bytes and tf > 512:
        tf = max(512, _round_up(tf // 2, ALIGN))
    if vmem_bytes(tm, tf, wbuf) > vmem_budget_bytes and wbuf > 2:
        wbuf = 2
    while vmem_bytes(tm, tf, wbuf) > vmem_budget_bytes and tm > 256:
        tm = max(256, _round_up(tm // 2, ALIGN))
    while vmem_bytes(tm, tf, wbuf) > vmem_budget_bytes and tf > 256:
        tf = max(256, _round_up(tf // 2, ALIGN))
    while vmem_bytes(tm, tf, wbuf) > vmem_budget_bytes and tm > 128:
        tm = max(128, _round_up(tm // 2, 128))

    # ffn axis must be covered by whole tf-slabs (extra zero padding is exact)
    F_pad = _round_up(F_pad, tf)
    M_pad = _round_up(M, tm)
    n_f = F_pad // tf
    n_row = M_pad // tm
    if n_f < 3:
        wbuf = 2  # deeper weight prefetch is pointless with <3 ffn steps

    # ---- zero-pad (exact: GELU(0)=0, zero W2 rows, padded rows/cols sliced off) --------
    x2d = x.reshape(M, H)
    if (M_pad, H_pad) != (M, H):
        x2d = jnp.pad(x2d, ((0, M_pad - M), (0, H_pad - H)))
    w1p = jnp.pad(w1, ((0, H_pad - H), (0, F_pad - F_)))
    w2p = jnp.pad(w2, ((0, F_pad - F_), (0, H_pad - H)))
    b1p = jnp.pad(b1, (0, F_pad - F_)).reshape(1, F_pad)
    b2p = jnp.pad(b2, (0, H_pad - H)).reshape(1, H_pad)

    grid = (n_row, n_f)

    # Accurate advisory byte count: weights are re-streamed once per row tile.
    cost = pl.CostEstimate(
        flops=2 * 2 * M_pad * H_pad * F_pad,                 # two matmuls
        transcendentals=M_pad * F_pad,                       # one erf/tanh per hidden elem
        bytes_accessed=itemsize * (2 * M_pad * H_pad                       # x in + out
                                   + n_row * (2 * H_pad * F_pad + F_pad)   # W1+W2+b1 per row tile
                                   + H_pad),                               # b2
    )

    kernel = functools.partial(ffn_kernel, approximate=approximate)

    out2d = pl.pallas_call(
        kernel,
        out_shape=jax.ShapeDtypeStruct((M_pad, H_pad), dtype),
        grid_spec=pltpu.PrefetchScalarGridSpec(
            num_scalar_prefetch=0,
            grid=grid,
            in_specs=[
                pl.BlockSpec((tm, H_pad), lambda i, f: (i, 0)),                 # x rows
                _maybe_buffered_spec((H_pad, tf), lambda i, f: (0, f), wbuf),   # W1 slab
                pl.BlockSpec((1, tf),     lambda i, f: (0, f)),                 # b1 slab
                _maybe_buffered_spec((tf, H_pad), lambda i, f: (f, 0), wbuf),   # W2 slab
                pl.BlockSpec((1, H_pad),  lambda i, f: (0, 0)),                 # b2
            ],
            out_specs=pl.BlockSpec((tm, H_pad), lambda i, f: (i, 0)),
            scratch_shapes=[pltpu.VMEM((tm, H_pad), jnp.float32)],
        ),
        compiler_params=pltpu.CompilerParams(
            dimension_semantics=("parallel", "arbitrary"),
            vmem_limit_bytes=vmem_limit_bytes,
        ),
        cost_estimate=cost,
    )(x2d, w1p, b1p, w2p, b2p)

    return out2d[:M, :H].reshape(B, S, H)


def init_linear_params(key, in_features, out_features, dtype=jnp.float32):
    """Mimics torch.nn.Linear default init: U(-1/sqrt(in), 1/sqrt(in))."""
    kw, kb = jax.random.split(key)
    bound = 1.0 / math.sqrt(in_features)
    # stored as (in_features, out_features) so the kernel does x @ W
    w = jax.random.uniform(kw, (in_features, out_features), dtype,
                           minval=-bound, maxval=bound)
    b = jax.random.uniform(kb, (out_features,), dtype,
                           minval=-bound, maxval=bound)
    return w, b


if __name__ == "__main__":
    key = jax.random.PRNGKey(0)
    k_x, k_l1, k_l2 = jax.random.split(key, 3)

    batch, seq, hidden, ffn = 2, 8, 32, 64

    x = jax.random.normal(k_x, (batch, seq, hidden), dtype=jnp.float32)
    w1, b1 = init_linear_params(k_l1, hidden, ffn)
    w2, b2 = init_linear_params(k_l2, ffn, hidden)

    out = feed_forward_network(x, w1, b1, w2, b2)
    out = jax.block_until_ready(out)

    # pure-JAX reference check (exact erf GELU, matching torch.nn.GELU())
    h_ref = x.reshape(-1, hidden) @ w1 + b1
    h_ref = 0.5 * h_ref * (1.0 + jax.lax.erf(h_ref / math.sqrt(2.0)))
    ref = (h_ref @ w2 + b2).reshape(batch, seq, hidden)
    assert out.shape == ref.shape
    assert jnp.allclose(out, ref, atol=1e-4, rtol=1e-4), "mismatch vs reference"

    print("KERNEL_OK")
</pallas_src>

<mosaic_0001>
module attributes {stable_mosaic.version = 11 : i64} {
  func.func @ffn_kernel(%arg0: i32, %arg1: i32, %arg2: memref<256x256xf32, #tpu.memory_space<vmem>>, %arg3: memref<256x256xf32, #tpu.memory_space<vmem>>, %arg4: memref<1x256xf32, #tpu.memory_space<vmem>>, %arg5: memref<256x256xf32, #tpu.memory_space<vmem>>, %arg6: memref<1x256xf32, #tpu.memory_space<vmem>>, %arg7: memref<256x256xf32, #tpu.memory_space<vmem>>, %arg8: memref<256x256xf32, #tpu.memory_space<vmem>>) attributes {dimension_semantics = [#tpu.dimension_semantics<parallel>, #tpu.dimension_semantics<arbitrary>], iteration_bounds = array<i64: 1, 1>, scalar_prefetch = 0 : i64, scratch_operands = 1 : i64, tpu.core_type = #tpu.core_type<tc>, window_params = [{transform_indices = @transform_0, window_bounds = array<i64: 256, 256>}, {transform_indices = @transform_1, window_bounds = array<i64: 256, 256>}, {transform_indices = @transform_2, window_bounds = array<i64: 1, 256>}, {transform_indices = @transform_3, window_bounds = array<i64: 256, 256>}, {pipeline_mode = #tpu.pipeline_mode<synchronous>, transform_indices = @transform_4, window_bounds = array<i64: 1, 256>}, {transform_indices = @transform_5, window_bounds = array<i64: 256, 256>}]} {
    %c0_i32 = arith.constant 0 : i32
    %0 = arith.cmpi eq, %arg1, %c0_i32 : i32
    %1 = arith.extui %0 : i1 to i32
    %c0_i32_0 = arith.constant 0 : i32
    %2 = arith.cmpi ne, %1, %c0_i32_0 : i32
    scf.if %2 {
      %cst_18 = arith.constant 0.000000e+00 : f32
      %25 = vector.broadcast %cst_18 : f32 to vector<256x256xf32>
      %c0_19 = arith.constant 0 : index
      %c0_20 = arith.constant 0 : index
      %26 = vector.load %arg8[%c0_19, %c0_20] : memref<256x256xf32, #tpu.memory_space<vmem>>, vector<256x256xf32>
      tpu.vector_store %arg8[%c0_19, %c0_20], %25 {strides = array<i32>} : memref<256x256xf32, #tpu.memory_space<vmem>>, vector<256x256xf32>,
    } else {
    }
    %c0 = arith.constant 0 : index
    %c0_1 = arith.constant 0 : index
    %3 = vector.load %arg2[%c0, %c0_1] : memref<256x256xf32, #tpu.memory_space<vmem>>, vector<256x256xf32>
    %c0_2 = arith.constant 0 : index
    %c0_3 = arith.constant 0 : index
    %4 = vector.load %arg3[%c0_2, %c0_3] : memref<256x256xf32, #tpu.memory_space<vmem>>, vector<256x256xf32>
    %cst = arith.constant dense<0.000000e+00> : vector<256x256xf32>
    %5 = tpu.matmul %3, %4, %cst {dimension_numbers = #tpu.dot_dimension_numbers<[1], [0], [0], [1], [0, 0, 1, 1], [], []>} : vector<256x256xf32>, vector<256x256xf32>, vector<256x256xf32> -> vector<256x256xf32>
    %c0_4 = arith.constant 0 : index
    %c0_5 = arith.constant 0 : index
    %6 = vector.load %arg4[%c0_4, %c0_5] : memref<1x256xf32, #tpu.memory_space<vmem>>, vector<1x256xf32>
    %7 = vector.broadcast %6 : vector<1x256xf32> to vector<256x256xf32>
    %8 = arith.addf %5, %7 : vector<256x256xf32>
    %cst_6 = arith.constant 5.000000e-01 : f32
    %9 = vector.broadcast %cst_6 : f32 to vector<256x256xf32>
    %10 = arith.mulf %9, %8 : vector<256x256xf32>
    %cst_7 = arith.constant 0.707106769 : f32
    %11 = vector.broadcast %cst_7 : f32 to vector<256x256xf32>
    %12 = arith.mulf %8, %11 : vector<256x256xf32>
    %13 = math.erf %12 : vector<256x256xf32>
    %cst_8 = arith.constant 1.000000e+00 : f32
    %14 = vector.broadcast %cst_8 : f32 to vector<256x256xf32>
    %15 = arith.addf %14, %13 : vector<256x256xf32>
    %16 = arith.mulf %10, %15 : vector<256x256xf32>
    %c0_9 = arith.constant 0 : index
    %c0_10 = arith.constant 0 : index
    %17 = vector.load %arg8[%c0_9, %c0_10] : memref<256x256xf32, #tpu.memory_space<vmem>>, vector<256x256xf32>
    %c0_11 = arith.constant 0 : index
    %c0_12 = arith.constant 0 : index
    %18 = vector.load %arg5[%c0_11, %c0_12] : memref<256x256xf32, #tpu.memory_space<vmem>>, vector<256x256xf32>
    %cst_13 = arith.constant dense<0.000000e+00> : vector<256x256xf32>
    %19 = tpu.matmul %16, %18, %cst_13 {dimension_numbers = #tpu.dot_dimension_numbers<[1], [0], [0], [1], [0, 0, 1, 1], [], []>} : vector<256x256xf32>, vector<256x256xf32>, vector<256x256xf32> -> vector<256x256xf32>
    %20 = arith.addf %17, %19 : vector<256x256xf32>
    %c0_14 = arith.constant 0 : index
    %c0_15 = arith.constant 0 : index
    %21 = vector.load %arg8[%c0_14, %c0_15] : memref<256x256xf32, #tpu.memory_space<vmem>>, vector<256x256xf32>
    tpu.vector_store %arg8[%c0_14, %c0_15], %20 {strides = array<i32>} : memref<256x256xf32, #tpu.memory_space<vmem>>, vector<256x256xf32>,
    %c0_i32_16 = arith.constant 0 : i32
    %22 = arith.cmpi eq, %arg1, %c0_i32_16 : i32
    %23 = arith.extui %22 : i1 to i32
    %c0_i32_17 = arith.constant 0 : i32
    %24 = arith.cmpi ne, %23, %c0_i32_17 : i32
    scf.if %24 {
      %c0_18 = arith.constant 0 : index
      %c0_19 = arith.constant 0 : index
      %25 = vector.load %arg8[%c0_18, %c0_19] : memref<256x256xf32, #tpu.memory_space<vmem>>, vector<256x256xf32>
      %c0_20 = arith.constant 0 : index
      %c0_21 = arith.constant 0 : index
      %26 = vector.load %arg6[%c0_20, %c0_21] : memref<1x256xf32, #tpu.memory_space<vmem>>, vector<1x256xf32>
      %27 = vector.broadcast %26 : vector<1x256xf32> to vector<256x256xf32>
      %28 = arith.addf %25, %27 : vector<256x256xf32>
      %c0_22 = arith.constant 0 : index
      %c0_23 = arith.constant 0 : index
      %29 = vector.load %arg7[%c0_22, %c0_23] : memref<256x256xf32, #tpu.memory_space<vmem>>, vector<256x256xf32>
      tpu.vector_store %arg7[%c0_22, %c0_23], %28 {strides = array<i32>} : memref<256x256xf32, #tpu.memory_space<vmem>>, vector<256x256xf32>,
    } else {
    }
    return
  }
  func.func @transform_0(%arg0: i32, %arg1: i32) -> (i32, i32) {
    %c0_i32 = arith.constant 0 : i32
    %c0_i32_0 = arith.constant 0 : i32
    return %arg0, %c0_i32 : i32, i32
  }
  func.func @transform_1(%arg0: i32, %arg1: i32) -> (i32, i32) {
    %c0_i32 = arith.constant 0 : i32
    %c0_i32_0 = arith.constant 0 : i32
    return %c0_i32, %arg1 : i32, i32
  }
  func.func @transform_2(%arg0: i32, %arg1: i32) -> (i32, i32) {
    %c0_i32 = arith.constant 0 : i32
    %c0_i32_0 = arith.constant 0 : i32
    return %c0_i32, %arg1 : i32, i32
  }
  func.func @transform_3(%arg0: i32, %arg1: i32) -> (i32, i32) {
    %c0_i32 = arith.constant 0 : i32
    %c0_i32_0 = arith.constant 0 : i32
    return %arg1, %c0_i32 : i32, i32
  }
  func.func @transform_4(%arg0: i32, %arg1: i32) -> (i32, i32) {
    %c0_i32 = arith.constant 0 : i32
    %c0_i32_0 = arith.constant 0 : i32
    %c0_i32_1 = arith.constant 0 : i32
    return %c0_i32, %c0_i32_0 : i32, i32
  }
  func.func @transform_5(%arg0: i32, %arg1: i32) -> (i32, i32) {
    %c0_i32 = arith.constant 0 : i32
    %c0_i32_0 = arith.constant 0 : i32
    return %arg0, %c0_i32 : i32, i32
  }
}

</mosaic_0001>

<bundles_post_ra>
// kernel: tpu_custom_call.1
= control target key start
LH: loop header
LB: loop body
LE: loop exit
PB: predicated region body
PF: predicated region fallthrough
CT: control target
= control target key end

     0   :  { %10 = vsyncpa [#allocation4], 0  ;;  %s2406_s0 = inlined_call_operand.hbm [shape: f32[256,256], index: 0, kind: input, shape index: {}]   ;;  %s2407_s1 = inlined_call_operand.hbm [shape: f32[256,256], index: 1, kind: input, shape index: {}]   ;;  %s2408_s2 = inlined_call_operand.vmem [shape: f32[1,256], index: 2, kind: input, shape index: {}]   ;;  %s2409_s3 = inlined_call_operand.hbm [shape: f32[256,256], index: 3, kind: input, shape index: {}]   ;;  %s2410_s4 = inlined_call_operand.vmem [shape: f32[1,256], index: 4, kind: input, shape index: {}]   ;;  %s2411_s5 = inlined_call_operand.hbm [shape: f32[256,256], index: 5, kind: output, shape index: {}]  }
   0x1   :  { %11 = vsyncpa [#allocation7], 0 }
   0x2   :  { %12 = vsyncpa [#allocation5], 0  ;;  %s1941_s18 = smov [#allocation6]   ;;  %s1942_s20 = smov [#allocation3]  }
   0x3   :  { %s30_s19 = sshll.u32 %s1941_s18, 4  ;;  %s18_s21 = sshll.u32 %s1942_s20, 4  ;;  %s31_s19 = int_to_ptr.vmem [resolvable:$true] %s30_s19  ;;  %s1977_s21 = int_to_ptr.vmem [resolvable:$true] %s18_s21 }
   0x4   :  { %s1847_s24 = scalar_lea.hbm %s2407_s1, 8192 }
   0x5   :  { %p1848_p0 = scmp.ne.s32.totalorder %s2407_s1, %s1847_s24  ;;  %p1851_p1 = scmp.lt.u32.totalorder %s1847_s24, %s2407_s1 }
   0x7   :  { %p1853_p2 = pnand %p1851_p1, %p1848_p0 }
   0x9   :  { %1856 = shalt.err (!%p1853_p2)
}
   0xa   :  { %s1857_s29 = scalar_lea.vmem %s31_s19, 8192  ;;  %p1862_p4 = scmp.lt.s32.totalorder %s31_s19, %s31_s19 }
   0xb   :  { %p1858_p3 = scmp.ne.s32.totalorder %s31_s19, %s1857_s29  ;;  %p1863_p5 = scmp.lt.s32.totalorder %s1857_s29, %s1857_s29 }
   0xd   :  { %p1864_p6 = por %p1863_p5, %p1862_p4 }
   0xf   :  { %p1865_p7 = pnand %p1864_p6, %p1858_p3 }
  0x11   :  { %1868 = shalt.err (!%p1865_p7)
}
  0x12   :  { %s1943_s30 = smov 256   ;;  %s1944_s6 = smov 16  }
  0x13   :  { %36 = dma.hbm_to_vmem [thread:$0]  %s2407_s1, 8192, %s31_s19, [#allocation7], %s1943_s30, %s1943_s30, %s1944_s6  }
  0x14   :  { %s1869_s11 = scalar_lea.hbm %s2406_s0, 8192 }
  0x15   :  { %p1870_p8 = scmp.ne.s32.totalorder %s2406_s0, %s1869_s11  ;;  %p1873_p9 = scmp.lt.u32.totalorder %s1869_s11, %s2406_s0 }
  0x17   :  { %p1875_p10 = pnand %p1873_p9, %p1870_p8 }
  0x19   :  { %1878 = shalt.err (!%p1875_p10)
}
  0x1a   :  { %s1879_s16 = scalar_lea.vmem %s1977_s21, 8192  ;;  %p1884_p12 = scmp.lt.s32.totalorder %s1977_s21, %s1977_s21 }
  0x1b   :  { %p1880_p11 = scmp.ne.s32.totalorder %s1977_s21, %s1879_s16  ;;  %p1885_p13 = scmp.lt.s32.totalorder %s1879_s16, %s1879_s16 }
  0x1d   :  { %p1886_p0 = por %p1885_p13, %p1884_p12 }
  0x1f   :  { %p1887_p1 = pnand %p1886_p0, %p1880_p11 }
  0x21   :  { %1890 = shalt.err (!%p1887_p1)
}
  0x22   :  { %24 = dma.hbm_to_vmem [thread:$0]  %s2406_s0, 8192, %s1977_s21, [#allocation4], %s1943_s30, %s1943_s30, %s1944_s6  }
  0x23   :  { %s1945_s18 = smov [#allocation8]   ;;  %s1891_s23 = scalar_lea.hbm %s2409_s3, 8192 }
  0x24   :  { %s44_s19 = sshll.u32 %s1945_s18, 4  ;;  %p1892_p2 = scmp.ne.s32.totalorder %s2409_s3, %s1891_s23  ;;  %s45_s19 = int_to_ptr.vmem [resolvable:$true] %s44_s19 }
  0x25   :  { %p1895_p3 = scmp.lt.u32.totalorder %s1891_s23, %s2409_s3 }
  0x27   :  { %p1897_p4 = pnand %p1895_p3, %p1892_p2 }
  0x29   :  { %1900 = shalt.err (!%p1897_p4)
}
  0x2a   :  { %s1901_s28 = scalar_lea.vmem %s45_s19, 8192  ;;  %p1906_p6 = scmp.lt.s32.totalorder %s45_s19, %s45_s19 }
  0x2b   :  { %p1902_p5 = scmp.ne.s32.totalorder %s45_s19, %s1901_s28  ;;  %p1907_p7 = scmp.lt.s32.totalorder %s1901_s28, %s1901_s28 }
  0x2d   :  { %p1908_p8 = por %p1907_p7, %p1906_p6 }
  0x2f   :  { %p1909_p9 = pnand %p1908_p8, %p1902_p5 }
  0x31   :  { %1912 = shalt.err (!%p1909_p9)
}
  0x32   :  { %50 = dma.hbm_to_vmem [thread:$0]  %s2409_s3, 8192, %s45_s19, [#allocation7], %s1943_s30, %s1943_s30, %s1944_s6  }
  0x33   :  { %1935 = dma.done.wait [#allocation4], 8192  }
  0x34   :  { %1936 = vsyncadd [#allocation4], 4294959104 }
  0x35   :  { %1937 = dma.done.wait [#allocation7], 16384  }
  0x36   :  { %1938 = vsyncadd [#allocation7], 4294950912  ;;  %v195_v0 = vld [vmem:[#allocation6 + $0x8] sm:$0xff]  ;;  %v197_v1 = vld [vmem:[#allocation6 + $0x18] sm:$0xff] }
  0x37   :  { %v194_v2 = vld [vmem:[#allocation6] sm:$0xff]  ;;  %v1585_v3 = vpack.c.bf16 %v197_v1, %v195_v0  ;;  %v196_v4 = vld [vmem:[#allocation6 + $0x10] sm:$0xff]  ;;  %v199_v5 = vld [vmem:[#allocation6 + $0x28] sm:$0xff] }
  0x38   :  { %v201_v6 = vld [vmem:[#allocation6 + $0x38] sm:$0xff]  ;;  %v1587_v7 = vpack.c.bf16 %v196_v4, %v194_v2  ;;  %v198_v9 = vld [vmem:[#allocation6 + $0x20] sm:$0xff]  ;;  %v200_v10 = vld [vmem:[#allocation6 + $0x30] sm:$0xff] }
  0x39   :  { %v1589_v8 = vpack.c.bf16 %v201_v6, %v199_v5  ;;  %v203_v11 = vld [vmem:[#allocation6 + $0x48] sm:$0xff]  ;;  %1586 = vmatprep.subr.bf16.mxu0 %v1585_v3  ;;  %v205_v12 = vld [vmem:[#allocation6 + $0x58] sm:$0xff]  ;;  %v1591_v13 = vpack.c.bf16 %v200_v10, %v198_v9  ;;  %v202_v15 = vld [vmem:[#allocation6 + $0x40] sm:$0xff] }
  0x3a   :  { %1588 = vmatpush1.bf16.msra.mxu0 %v1587_v7  ;;  %v1593_v14 = vpack.c.bf16 %v205_v12, %v203_v11  ;;  %v204_v16 = vld [vmem:[#allocation6 + $0x50] sm:$0xff]  ;;  %v207_v17 = vld [vmem:[#allocation6 + $0x68] sm:$0xff]  ;;  %v209_v18 = vld [vmem:[#allocation6 + $0x78] sm:$0xff] }
  0x3b   :  { %1590 = vmatprep.subr.bf16.mxu0 %v1589_v8  ;;  %v1595_v19 = vpack.c.bf16 %v204_v16, %v202_v15  ;;  %v1597_v20 = vpack.c.bf16 %v209_v18, %v207_v17  ;;  %v206_v21 = vld [vmem:[#allocation6 + $0x60] sm:$0xff]  ;;  %v208_v22 = vld [vmem:[#allocation6 + $0x70] sm:$0xff]  ;;  %v211_v23 = vld [vmem:[#allocation6 + $0x88] sm:$0xff] }
  0x3c   :  { %v213_v24 = vld [vmem:[#allocation6 + $0x98] sm:$0xff]  ;;  %v1599_v25 = vpack.c.bf16 %v208_v22, %v206_v21  ;;  %v210_v27 = vld [vmem:[#allocation6 + $0x80] sm:$0xff]  ;;  %v212_v28 = vld [vmem:[#allocation6 + $0x90] sm:$0xff] }
  0x3d   :  { %v1601_v26 = vpack.c.bf16 %v213_v24, %v211_v23  ;;  %v215_v29 = vld [vmem:[#allocation6 + $0xa8] sm:$0xff]  ;;  %v217_v30 = vld [vmem:[#allocation6 + $0xb8] sm:$0xff]  ;;  %v1603_v31 = vpack.c.bf16 %v212_v28, %v210_v27  ;;  %v214_v33 = vld [vmem:[#allocation6 + $0xa0] sm:$0xff] }
  0x3e   :  { %1592 = vmatpush1.bf16.msra.mxu0 %v1591_v13  ;;  %v1605_v32 = vpack.c.bf16 %v217_v30, %v215_v29  ;;  %v216_v34 = vld [vmem:[#allocation6 + $0xb0] sm:$0xff]  ;;  %v219_v35 = vld [vmem:[#allocation6 + $0xc8] sm:$0xff]  ;;  %v221_v36 = vld [vmem:[#allocation6 + $0xd8] sm:$0xff] }
  0x3f   :  { %1594 = vmatprep.subr.bf16.mxu0 %v1593_v14  ;;  %v1607_v37 = vpack.c.bf16 %v216_v34, %v214_v33  ;;  %v1609_v38 = vpack.c.bf16 %v221_v36, %v219_v35  ;;  %v218_v39 = vld [vmem:[#allocation6 + $0xc0] sm:$0xff]  ;;  %v220_v40 = vld [vmem:[#allocation6 + $0xd0] sm:$0xff]  ;;  %v131_v41 = vld [vmem:[#allocation3 + $0x8] sm:$0xff] }
  0x40   :  { %v223_v42 = vld [vmem:[#allocation6 + $0xe8] sm:$0xff]  ;;  %v225_v43 = vld [vmem:[#allocation6 + $0xf8] sm:$0xff]  ;;  %334 = vmatprep.mubr.f32.mxu0 %v131_v41  ;;  %v1611_v44 = vpack.c.bf16 %v220_v40, %v218_v39  ;;  %v222_v46 = vld [vmem:[#allocation6 + $0xe0] sm:$0xff] }
  0x41   :  { %v1613_v45 = vpack.c.bf16 %v225_v43, %v223_v42  ;;  %v224_v47 = vld [vmem:[#allocation6 + $0xf0] sm:$0xff]  ;;  %v227_v48 = vld [vmem:[#allocation6 + $0x108] sm:$0xff]  ;;  %v229_v49 = vld [vmem:[#allocation6 + $0x118] sm:$0xff] }
  0x42   :  { %1596 = vmatpush1.bf16.msra.mxu0 %v1595_v19  ;;  %v1615_v50 = vpack.c.bf16 %v224_v47, %v222_v46  ;;  %v1617_v51 = vpack.c.bf16 %v229_v49, %v227_v48  ;;  %v226_v52 = vld [vmem:[#allocation6 + $0x100] sm:$0xff]  ;;  %v228_v53 = vld [vmem:[#allocation6 + $0x110] sm:$0xff]  ;;  %v231_v54 = vld [vmem:[#allocation6 + $0x128] sm:$0xff] }
  0x43   :  { %1598 = vmatprep.subr.bf16.mxu0 %v1597_v20  ;;  %v233_v55 = vld [vmem:[#allocation6 + $0x138] sm:$0xff]  ;;  %v1619_v56 = vpack.c.bf16 %v228_v53, %v226_v52  ;;  %v230_v58 = vld [vmem:[#allocation6 + $0x120] sm:$0xff]  ;;  %v232_v59 = vld [vmem:[#allocation6 + $0x130] sm:$0xff] }
  0x44   :  { %v1621_v57 = vpack.c.bf16 %v233_v55, %v231_v54  ;;  %v235_v60 = vld [vmem:[#allocation6 + $0x148] sm:$0xff]  ;;  %v237_v61 = vld [vmem:[#allocation6 + $0x158] sm:$0xff]  ;;  %v1623_v62 = vpack.c.bf16 %v232_v59, %v230_v58  ;;  %v234_v0 = vld [vmem:[#allocation6 + $0x140] sm:$0xff] }
  0x45   :  { %v1625_v63 = vpack.c.bf16 %v237_v61, %v235_v60  ;;  %v236_v1 = vld [vmem:[#allocation6 + $0x150] sm:$0xff]  ;;  %v239_v2 = vld [vmem:[#allocation6 + $0x168] sm:$0xff]  ;;  %v241_v3 = vld [vmem:[#allocation6 + $0x178] sm:$0xff] }
  0x46   :  { %1600 = vmatpush1.bf16.msra.mxu0 %v1599_v25  ;;  %v1627_v4 = vpack.c.bf16 %v236_v1, %v234_v0  ;;  %v1629_v5 = vpack.c.bf16 %v241_v3, %v239_v2  ;;  %v238_v6 = vld [vmem:[#allocation6 + $0x160] sm:$0xff]  ;;  %v240_v7 = vld [vmem:[#allocation6 + $0x170] sm:$0xff]  ;;  %v243_v8 = vld [vmem:[#allocation6 + $0x188] sm:$0xff] }
  0x47   :  { %1602 = vmatprep.subr.bf16.mxu0 %v1601_v26  ;;  %v245_v9 = vld [vmem:[#allocation6 + $0x198] sm:$0xff]  ;;  %v1631_v10 = vpack.c.bf16 %v240_v7, %v238_v6  ;;  %v242_v12 = vld [vmem:[#allocation6 + $0x180] sm:$0xff]  ;;  %v244_v13 = vld [vmem:[#allocation6 + $0x190] sm:$0xff] }
  0x48   :  { %v1633_v11 = vpack.c.bf16 %v245_v9, %v243_v8  ;;  %v247_v14 = vld [vmem:[#allocation6 + $0x1a8] sm:$0xff]  ;;  %v249_v15 = vld [vmem:[#allocation6 + $0x1b8] sm:$0xff]  ;;  %v1635_v16 = vpack.c.bf16 %v244_v13, %v242_v12  ;;  %v246_v18 = vld [vmem:[#allocation6 + $0x1a0] sm:$0xff] }
  0x49   :  { %v1637_v17 = vpack.c.bf16 %v249_v15, %v247_v14  ;;  %v248_v19 = vld [vmem:[#allocation6 + $0x1b0] sm:$0xff]  ;;  %v251_v20 = vld [vmem:[#allocation6 + $0x1c8] sm:$0xff]  ;;  %v253_v21 = vld [vmem:[#allocation6 + $0x1d8] sm:$0xff] }
  0x4a   :  { %1604 = vmatpush1.bf16.msra.mxu0 %v1603_v31  ;;  %v1639_v22 = vpack.c.bf16 %v248_v19, %v246_v18  ;;  %v1641_v23 = vpack.c.bf16 %v253_v21, %v251_v20  ;;  %v250_v24 = vld [vmem:[#allocation6 + $0x1c0] sm:$0xff]  ;;  %v252_v25 = vld [vmem:[#allocation6 + $0x1d0] sm:$0xff]  ;;  %v255_v26 = vld [vmem:[#allocation6 + $0x1e8] sm:$0xff] }
  0x4b   :  { %1606 = vmatprep.subr.bf16.mxu0 %v1605_v32  ;;  %v257_v27 = vld [vmem:[#allocation6 + $0x1f8] sm:$0xff]  ;;  %v1643_v28 = vpack.c.bf16 %v252_v25, %v250_v24  ;;  %v254_v30 = vld [vmem:[#allocation6 + $0x1e0] sm:$0xff]  ;;  %v256_v31 = vld [vmem:[#allocation6 + $0x1f0] sm:$0xff] }
  0x4c   :  { %v1645_v29 = vpack.c.bf16 %v257_v27, %v255_v26  ;;  %v1647_v32 = vpack.c.bf16 %v256_v31, %v254_v30  ;;  %v130_v33 = vld [vmem:[#allocation3] sm:$0xff]  ;;  %v133_v34 = vld [vmem:[#allocation3 + $0x18] sm:$0xff]  ;;  %v912_v35 = vld [vmem:[#allocation8 + $0x8] sm:$0xff] }
  0x4d   :  { %v914_v36 = vld [vmem:[#allocation8 + $0x18] sm:$0xff]  ;;  %v913_v39 = vld [vmem:[#allocation8 + $0x10] sm:$0xff]  ;;  %v916_v40 = vld [vmem:[#allocation8 + $0x28] sm:$0xff] }
  0x4e   :  { %1608 = vmatpush1.bf16.msra.mxu0 %v1607_v37  ;;  %v911_v37 = vld [vmem:[#allocation8] sm:$0xff]  ;;  %v918_v41 = vld [vmem:[#allocation8 + $0x38] sm:$0xff]  ;;  %v920_v46 = vld [vmem:[#allocation8 + $0x48] sm:$0xff] }
  0x4f   :  { %1610 = vmatprep.subr.bf16.mxu0 %v1609_v38  ;;  %v1649_v38 = vpack.c.bf16 %v914_v36, %v912_v35  ;;  %v1651_v42 = vpack.c.bf16 %v913_v39, %v911_v37  ;;  %v1653_v43 = vpack.c.bf16 %v918_v41, %v916_v40  ;;  %v922_v47 = vld [vmem:[#allocation8 + $0x58] sm:$0xff]  ;;  %v132_v49 = vld [vmem:[#allocation3 + $0x10] sm:$0xff]  ;;  %v135_v53 = vld [vmem:[#allocation3 + $0x28] sm:$0xff] }
  0x50   :  { %v921_v52 = vld [vmem:[#allocation8 + $0x50] sm:$0xff]  ;;  %v924_v54 = vld [vmem:[#allocation8 + $0x68] sm:$0xff]  ;;  %v926_v55 = vld [vmem:[#allocation8 + $0x78] sm:$0xff] }
  0x51   :  { %1650 = vmatprep.subr.bf16.mxu1 %v1649_v38  ;;  %v1661_v58 = vpack.c.bf16 %v926_v55, %v924_v54  ;;  %v923_v59 = vld [vmem:[#allocation8 + $0x60] sm:$0xff]  ;;  %v925_v60 = vld [vmem:[#allocation8 + $0x70] sm:$0xff]  ;;  %v137_v61 = vld [vmem:[#allocation3 + $0x38] sm:$0xff] }
  0x52   :  { %1612 = vmatpush1.bf16.msra.mxu0 %v1611_v44  ;;  %v915_v44 = vld [vmem:[#allocation8 + $0x20] sm:$0xff]  ;;  %1652 = vmatpush1.bf16.msra.mxu1 %v1651_v42  ;;  %v1663_v0 = vpack.c.bf16 %v925_v60, %v923_v59  ;;  %v136_v1 = vld [vmem:[#allocation3 + $0x30] sm:$0xff]  ;;  %v932_v6 = vld [vmem:[#allocation8 + $0xa8] sm:$0xff] }
  0x53   :  { %1614 = vmatprep.subr.bf16.mxu0 %v1613_v45  ;;  %v917_v45 = vld [vmem:[#allocation8 + $0x30] sm:$0xff]  ;;  %1654 = vmatprep.subr.bf16.mxu1 %v1653_v43  ;;  %v927_v3 = vld [vmem:[#allocation8 + $0x80] sm:$0xff]  ;;  %v934_v7 = vld [vmem:[#allocation8 + $0xb8] sm:$0xff] }
  0x54   :  { %v1655_v48 = vpack.c.bf16 %v917_v45, %v915_v44  ;;  %v138_v9 = vld [vmem:[#allocation3 + $0x40] sm:$0xff]  ;;  %v933_v12 = vld [vmem:[#allocation8 + $0xb0] sm:$0xff]  ;;  %v141_v13 = vld [vmem:[#allocation3 + $0x58] sm:$0xff] }
  0x55   :  { %v936_v14 = vld [vmem:[#allocation8 + $0xc8] sm:$0xff]  ;;  %v938_v15 = vld [vmem:[#allocation8 + $0xd8] sm:$0xff]  ;;  %v935_v19 = vld [vmem:[#allocation8 + $0xc0] sm:$0xff] }
  0x56   :  { %1616 = vmatpush1.bf16.msra.mxu0 %v1615_v50  ;;  %v1657_v50 = vpack.c.bf16 %v922_v47, %v920_v46  ;;  %1656 = vmatpush1.bf16.msra.mxu1 %v1655_v48  ;;  %v1673_v18 = vpack.c.bf16 %v938_v15, %v936_v14  ;;  %v937_v20 = vld [vmem:[#allocation8 + $0xd0] sm:$0xff]  ;;  %v143_v21 = vld [vmem:[#allocation3 + $0x68] sm:$0xff]  ;;  %v142_v25 = vld [vmem:[#allocation3 + $0x60] sm:$0xff] }
  0x57   :  { %1618 = vmatprep.subr.bf16.mxu0 %v1617_v51  ;;  %v919_v51 = vld [vmem:[#allocation8 + $0x40] sm:$0xff]  ;;  %v1675_v24 = vpack.c.bf16 %v937_v20, %v935_v19  ;;  %v944_v30 = vld [vmem:[#allocation8 + $0x108] sm:$0xff]  ;;  %v946_v31 = vld [vmem:[#allocation8 + $0x118] sm:$0xff] }
  0x58   :  { %1658 = vmatprep.subr.bf16.mxu1 %v1657_v50  ;;  %v939_v27 = vld [vmem:[#allocation8 + $0xe0] sm:$0xff]  ;;  %v945_v36 = vld [vmem:[#allocation8 + $0x110] sm:$0xff]  ;;  %v147_v37 = vld [vmem:[#allocation3 + $0x88] sm:$0xff] }
  0x59   :  { %v943_v35 = vld [vmem:[#allocation8 + $0x100] sm:$0xff]  ;;  %v948_v38 = vld [vmem:[#allocation8 + $0x128] sm:$0xff]  ;;  %v950_v39 = vld [vmem:[#allocation8 + $0x138] sm:$0xff] }
  0x5a   :  { %1620 = vmatpush1.bf16.msra.mxu0 %v1619_v56  ;;  %v1659_v56 = vpack.c.bf16 %v921_v52, %v919_v51  ;;  %v1683_v40 = vpack.c.bf16 %v945_v36, %v943_v35  ;;  %v146_v41 = vld [vmem:[#allocation3 + $0x80] sm:$0xff]  ;;  %v1685_v42 = vpack.c.bf16 %v950_v39, %v948_v38  ;;  %v949_v44 = vld [vmem:[#allocation8 + $0x130] sm:$0xff]  ;;  %v149_v45 = vld [vmem:[#allocation3 + $0x98] sm:$0xff] }
  0x5b   :  { %1622 = vmatprep.subr.bf16.mxu0 %v1621_v57  ;;  %v134_v57 = vld [vmem:[#allocation3 + $0x20] sm:$0xff]  ;;  %v952_v46 = vld [vmem:[#allocation8 + $0x148] sm:$0xff]  ;;  %v954_v47 = vld [vmem:[#allocation8 + $0x158] sm:$0xff] }
  0x5c   :  { %1660 = vmatpush1.bf16.msra.mxu1 %v1659_v56  ;;  %v947_v43 = vld [vmem:[#allocation8 + $0x120] sm:$0xff]  ;;  %v1689_v50 = vpack.c.bf16 %v954_v47, %v952_v46  ;;  %v953_v52 = vld [vmem:[#allocation8 + $0x150] sm:$0xff]  ;;  %v153_v56 = vld [vmem:[#allocation3 + $0xb8] sm:$0xff] }
  0x5d   :  { %1662 = vmatprep.subr.bf16.mxu1 %v1661_v58  ;;  %v1687_v48 = vpack.c.bf16 %v949_v44, %v947_v43  ;;  %v951_v51 = vld [vmem:[#allocation8 + $0x140] sm:$0xff]  ;;  %v155_v58 = vld [vmem:[#allocation3 + $0xc8] sm:$0xff]  ;;  %v157_v60 = vld [vmem:[#allocation3 + $0xd8] sm:$0xff] }
  0x5e   :  { %1624 = vmatpush1.bf16.msra.mxu0 %v1623_v62  ;;  %v928_v62 = vld [vmem:[#allocation8 + $0x88] sm:$0xff]  ;;  %v1691_v54 = vpack.c.bf16 %v953_v52, %v951_v51  ;;  %v150_v55 = vld [vmem:[#allocation3 + $0xa0] sm:$0xff]  ;;  %v957_v19 = vld [vmem:[#allocation8 + $0x170] sm:$0xff] }
  0x5f   :  { %1626 = vmatprep.subr.bf16.mxu0 %v1625_v63  ;;  %v930_v63 = vld [vmem:[#allocation8 + $0x98] sm:$0xff]  ;;  %v154_v59 = vld [vmem:[#allocation3 + $0xc0] sm:$0xff]  ;;  %v175_v14 = vld [vmem:[#allocation3 + $0x168] sm:$0xff] }
  0x60   :  { %v1665_v2 = vpack.c.bf16 %v930_v63, %v928_v62  ;;  %1664 = vmatpush1.bf16.msra.mxu1 %v1663_v0  ;;  %v159_v62 = vld [vmem:[#allocation3 + $0xe8] sm:$0xff]  ;;  %v158_v63 = vld [vmem:[#allocation3 + $0xe0] sm:$0xff]  ;;  %v161_v0 = vld [vmem:[#allocation3 + $0xf8] sm:$0xff] }
  0x61   :  { %v956_v15 = vld [vmem:[#allocation8 + $0x168] sm:$0xff]  ;;  %v965_v35 = vld [vmem:[#allocation8 + $0x1b0] sm:$0xff]  ;;  %v181_v38 = vld [vmem:[#allocation3 + $0x198] sm:$0xff] }
  0x62   :  { %1628 = vmatpush1.bf16.msra.mxu0 %v1627_v4  ;;  %v929_v4 = vld [vmem:[#allocation8 + $0x90] sm:$0xff]  ;;  %1666 = vmatprep.subr.bf16.mxu1 %v1665_v2  ;;  %v163_v2 = vld [vmem:[#allocation3 + $0x108] sm:$0xff] }
  0x63   :  { %1630 = vmatprep.subr.bf16.mxu0 %v1629_v5  ;;  %v139_v5 = vld [vmem:[#allocation3 + $0x48] sm:$0xff]  ;;  %v1667_v8 = vpack.c.bf16 %v929_v4, %v927_v3  ;;  %v162_v3 = vld [vmem:[#allocation3 + $0x100] sm:$0xff]  ;;  %v165_v4 = vld [vmem:[#allocation3 + $0x118] sm:$0xff] }
  0x64   :  { %v968_v39 = vld [vmem:[#allocation8 + $0x1c8] sm:$0xff]  ;;  %v969_v43 = vld [vmem:[#allocation8 + $0x1d0] sm:$0xff] }
  0x65   :  { %1668 = vmatpush1.bf16.msra.mxu1 %v1667_v8  ;;  %v169_v8 = vld [vmem:[#allocation3 + $0x138] sm:$0xff]  ;;  %v183_v46 = vld [vmem:[#allocation3 + $0x1a8] sm:$0xff]  ;;  %v973_v51 = vld [vmem:[#allocation8 + $0x1f0] sm:$0xff] }
  0x66   :  { %1632 = vmatpush1.bf16.msra.mxu0 %v1631_v10  ;;  %v1669_v10 = vpack.c.bf16 %v934_v7, %v932_v6  ;;  %v167_v6 = vld [vmem:[#allocation3 + $0x128] sm:$0xff]  ;;  %v166_v7 = vld [vmem:[#allocation3 + $0x120] sm:$0xff] }
  0x67   :  { %1634 = vmatprep.subr.bf16.mxu0 %v1633_v11  ;;  %v931_v11 = vld [vmem:[#allocation8 + $0xa0] sm:$0xff]  ;;  %v972_v47 = vld [vmem:[#allocation8 + $0x1e8] sm:$0xff] }
  0x68   :  { %1670 = vmatprep.subr.bf16.mxu1 %v1669_v10  ;;  %v171_v10 = vld [vmem:[#allocation3 + $0x148] sm:$0xff] }
  0x6a   :  { %1636 = vmatpush1.bf16.msra.mxu0 %v1635_v16  ;;  %v1671_v16 = vpack.c.bf16 %v933_v12, %v931_v11  ;;  %v170_v11 = vld [vmem:[#allocation3 + $0x140] sm:$0xff]  ;;  %v173_v12 = vld [vmem:[#allocation3 + $0x158] sm:$0xff] }
  0x6b   :  { %1638 = vmatprep.subr.bf16.mxu0 %v1637_v17  ;;  %v140_v17 = vld [vmem:[#allocation3 + $0x50] sm:$0xff] }
  0x6c   :  { %1672 = vmatpush1.bf16.msra.mxu1 %v1671_v16  ;;  %v958_v16 = vld [vmem:[#allocation8 + $0x178] sm:$0xff] }
  0x6d   :  { %1674 = vmatprep.subr.bf16.mxu1 %v1673_v18  ;;  %v955_v18 = vld [vmem:[#allocation8 + $0x160] sm:$0xff] }
  0x6e   :  { %1640 = vmatpush1.bf16.msra.mxu0 %v1639_v22  ;;  %v940_v22 = vld [vmem:[#allocation8 + $0xe8] sm:$0xff]  ;;  %v1695_v20 = vpack.c.bf16 %v957_v19, %v955_v18 }
  0x6f   :  { %1642 = vmatprep.subr.bf16.mxu0 %v1641_v23  ;;  %v942_v23 = vld [vmem:[#allocation8 + $0xf8] sm:$0xff] }
  0x70   :  { %v1677_v26 = vpack.c.bf16 %v942_v23, %v940_v22  ;;  %1676 = vmatpush1.bf16.msra.mxu1 %v1675_v24  ;;  %v177_v22 = vld [vmem:[#allocation3 + $0x178] sm:$0xff]  ;;  %v960_v23 = vld [vmem:[#allocation8 + $0x188] sm:$0xff] }
  0x71   :  { %v962_v24 = vld [vmem:[#allocation8 + $0x198] sm:$0xff] }
  0x72   :  { %1644 = vmatpush1.bf16.msra.mxu0 %v1643_v28  ;;  %v941_v28 = vld [vmem:[#allocation8 + $0xf0] sm:$0xff]  ;;  %1678 = vmatprep.subr.bf16.mxu1 %v1677_v26  ;;  %v959_v26 = vld [vmem:[#allocation8 + $0x180] sm:$0xff] }
  0x73   :  { %1646 = vmatprep.subr.bf16.mxu0 %v1645_v29  ;;  %v145_v29 = vld [vmem:[#allocation3 + $0x78] sm:$0xff] }
  0x76   :  { %1648 = vmatpush1.bf16.msra.mxu0 %v1647_v32  ;;  %v1679_v32 = vpack.c.bf16 %v941_v28, %v939_v27  ;;  %v961_v27 = vld [vmem:[#allocation8 + $0x190] sm:$0xff] }
  0x77   :  { %v1699_v28 = vpack.c.bf16 %v961_v27, %v959_v26 }
  0x78   :  { %1680 = vmatpush1.bf16.msra.mxu1 %v1679_v32  ;;  %v966_v32 = vld [vmem:[#allocation8 + $0x1b8] sm:$0xff] }
  0x79   :  { %335 = vmatmul.mubr.f32.vlgmr.msra.gmra.mrb[0].mxu0 %v130_v33  ;;  %v144_v33 = vld [vmem:[#allocation3 + $0x70] sm:$0xff] }
  0x7a   :  { %340 = vmatprep.mubr.f32.mxu0 %v133_v34  ;;  %v1681_v34 = vpack.c.bf16 %v946_v31, %v944_v30  ;;  %v179_v30 = vld [vmem:[#allocation3 + $0x188] sm:$0xff] }
  0x7b   :  { %v964_v31 = vld [vmem:[#allocation8 + $0x1a8] sm:$0xff] }
  0x7c   :  { %1682 = vmatprep.subr.bf16.mxu1 %v1681_v34  ;;  %v963_v34 = vld [vmem:[#allocation8 + $0x1a0] sm:$0xff] }
  0x7d   :  { %341 = vmatmul.mubr.f32.gmra.mrb[2].mxu0 %v132_v49  ;;  %1684 = vmatpush1.bf16.msra.mxu1 %v1683_v40  ;;  %v148_v49 = vld [vmem:[#allocation3 + $0x90] sm:$0xff]  ;;  %v1703_v36 = vpack.c.bf16 %v965_v35, %v963_v34  ;;  %v970_v40 = vld [vmem:[#allocation8 + $0x1d8] sm:$0xff] }
  0x7e   :  { %346 = vmatprep.mubr.f32.mxu0 %v135_v53  ;;  %1686 = vmatprep.subr.bf16.mxu1 %v1685_v42  ;;  %v151_v53 = vld [vmem:[#allocation3 + $0xa8] sm:$0xff]  ;;  %v967_v42 = vld [vmem:[#allocation8 + $0x1c0] sm:$0xff] }
  0x7f   :  { %v1707_v44 = vpack.c.bf16 %v969_v43, %v967_v42 }
  0x81   :  { %347 = vmatmul.mubr.f32.gmra.mrb[4].mxu0 %v134_v57  ;;  %1688 = vmatpush1.bf16.msra.mxu1 %v1687_v48  ;;  %v152_v57 = vld [vmem:[#allocation3 + $0xb0] sm:$0xff]  ;;  %v974_v48 = vld [vmem:[#allocation8 + $0x1f8] sm:$0xff] }
  0x82   :  { %352 = vmatprep.mubr.f32.mxu0 %v137_v61  ;;  %1690 = vmatprep.subr.bf16.mxu1 %v1689_v50  ;;  %v156_v61 = vld [vmem:[#allocation3 + $0xd0] sm:$0xff]  ;;  %v971_v50 = vld [vmem:[#allocation8 + $0x1e0] sm:$0xff] }
  0x83   :  { %v1711_v52 = vpack.c.bf16 %v973_v51, %v971_v50 }
  0x85   :  { %353 = vmatmul.mubr.f32.gmra.mrb[6].mxu0 %v136_v1  ;;  %1692 = vmatpush1.bf16.msra.mxu1 %v1691_v54  ;;  %v160_v1 = vld [vmem:[#allocation3 + $0xf0] sm:$0xff]  ;;  %v185_v54 = vld [vmem:[#allocation3 + $0x1b8] sm:$0xff] }
  0x86   :  { %358 = vmatprep.mubr.f32.mxu0 %v139_v5  ;;  %v164_v5 = vld [vmem:[#allocation3 + $0x110] sm:$0xff] }
  0x89   :  { %359 = vmatmul.mubr.f32.gmra.mrb[8].mxu0 %v138_v9  ;;  %v168_v9 = vld [vmem:[#allocation3 + $0x130] sm:$0xff] }
  0x8a   :  { %364 = vmatprep.mubr.f32.mxu0 %v141_v13  ;;  %v172_v13 = vld [vmem:[#allocation3 + $0x150] sm:$0xff] }
  0x8d   :  { %365 = vmatmul.mubr.f32.gmra.mrb[10].mxu0 %v140_v17  ;;  %v1693_v17 = vpack.c.bf16 %v958_v16, %v956_v15 }
  0x8e   :  { %370 = vmatprep.mubr.f32.mxu0 %v143_v21  ;;  %v174_v21 = vld [vmem:[#allocation3 + $0x160] sm:$0xff] }
  0x8f   :  { %1694 = vmatprep.subr.bf16.mxu1 %v1693_v17 }
  0x90   :  { %1696 = vmatpush1.bf16.msra.mxu1 %v1695_v20 }
  0x91   :  { %371 = vmatmul.mubr.f32.gmra.mrb[12].mxu0 %v142_v25  ;;  %v1697_v25 = vpack.c.bf16 %v962_v24, %v960_v23 }
  0x92   :  { %376 = vmatprep.mubr.f32.mxu0 %v145_v29  ;;  %v176_v29 = vld [vmem:[#allocation3 + $0x170] sm:$0xff] }
  0x93   :  { %1698 = vmatprep.subr.bf16.mxu1 %v1697_v25 }
  0x94   :  { %1700 = vmatpush1.bf16.msra.mxu1 %v1699_v28 }
  0x95   :  { %377 = vmatmul.mubr.f32.gmra.mrb[14].mxu0 %v144_v33  ;;  %v1701_v33 = vpack.c.bf16 %v966_v32, %v964_v31 }
  0x96   :  { %382 = vmatprep.mubr.f32.mxu0 %v147_v37  ;;  %v178_v37 = vld [vmem:[#allocation3 + $0x180] sm:$0xff] }
  0x97   :  { %1702 = vmatprep.subr.bf16.mxu1 %v1701_v33 }
  0x98   :  { %1704 = vmatpush1.bf16.msra.mxu1 %v1703_v36 }
  0x99   :  { %383 = vmatmul.mubr.f32.gmra.mrb[16].mxu0 %v146_v41  ;;  %v1705_v41 = vpack.c.bf16 %v970_v40, %v968_v39 }
  0x9a   :  { %388 = vmatprep.mubr.f32.mxu0 %v149_v45  ;;  %v180_v45 = vld [vmem:[#allocation3 + $0x190] sm:$0xff] }
  0x9b   :  { %1706 = vmatprep.subr.bf16.mxu1 %v1705_v41 }
  0x9c   :  { %1708 = vmatpush1.bf16.msra.mxu1 %v1707_v44 }
  0x9d   :  { %389 = vmatmul.mubr.f32.gmra.mrb[18].mxu0 %v148_v49  ;;  %v1709_v49 = vpack.c.bf16 %v974_v48, %v972_v47 }
  0x9e   :  { %394 = vmatprep.mubr.f32.mxu0 %v151_v53  ;;  %v182_v53 = vld [vmem:[#allocation3 + $0x1a0] sm:$0xff] }
  0x9f   :  { %1710 = vmatprep.subr.bf16.mxu1 %v1709_v49 }
  0xa0   :  { %1712 = vmatpush1.bf16.msra.mxu1 %v1711_v52 }
  0xa1   :  { %395 = vmatmul.mubr.f32.gmra.mrb[20].mxu0 %v150_v55  ;;  %v184_v55 = vld [vmem:[#allocation3 + $0x1b0] sm:$0xff] }
  0xa2   :  { %400 = vmatprep.mubr.f32.mxu0 %v153_v56  ;;  %v187_v56 = vld [vmem:[#allocation3 + $0x1c8] sm:$0xff] }
  0xa5   :  { %401 = vmatmul.mubr.f32.gmra.mrb[22].mxu0 %v152_v57  ;;  %v186_v57 = vld [vmem:[#allocation3 + $0x1c0] sm:$0xff] }
  0xa6   :  { %406 = vmatprep.mubr.f32.mxu0 %v155_v58  ;;  %v189_v58 = vld [vmem:[#allocation3 + $0x1d8] sm:$0xff] }
  0xa9   :  { %407 = vmatmul.mubr.f32.gmra.mrb[24].mxu0 %v154_v59  ;;  %v188_v59 = vld [vmem:[#allocation3 + $0x1d0] sm:$0xff] }
  0xaa   :  { %412 = vmatprep.mubr.f32.mxu0 %v157_v60  ;;  %v191_v60 = vld [vmem:[#allocation3 + $0x1e8] sm:$0xff] }
  0xad   :  { %413 = vmatmul.mubr.f32.gmra.mrb[26].mxu0 %v156_v61  ;;  %v190_v61 = vld [vmem:[#allocation3 + $0x1e0] sm:$0xff] }
  0xae   :  { %418 = vmatprep.mubr.f32.mxu0 %v159_v62  ;;  %v193_v62 = vld [vmem:[#allocation3 + $0x1f8] sm:$0xff] }
  0xb1   :  { %419 = vmatmul.mubr.f32.gmra.mrb[28].mxu0 %v158_v63  ;;  %v192_v63 = vld [vmem:[#allocation3 + $0x1f0] sm:$0xff] }
  0xb2   :  { %424 = vmatprep.mubr.f32.mxu0 %v161_v0  ;;  %v260_v0 = vlaneseq }
  0xb5   :  { %425 = vmatmul.mubr.f32.gmra.mrb[30].mxu0 %v160_v1  ;;  %v2029_v1 = vshrl.u32 %v260_v0, 7 }
  0xb6   :  { %430 = vmatprep.mubr.f32.mxu0 %v163_v2 }
  0xb7   :  { %v262_v2 = vsub.s32 0, %v2029_v1 }
  0xb9   :  { %431 = vmatmul.mubr.f32.gmra.mrb[32].mxu0 %v162_v3  ;;  %v258_v3 = vld [vmem:[%s2408_s2] sm:$0x3] }
  0xba   :  { %436 = vmatprep.mubr.f32.mxu0 %v165_v4  ;;  %v266_v4 = vsub.s32 1, %v2029_v1 }
  0xbd   :  { %437 = vmatmul.mubr.f32.gmra.mrb[34].mxu0 %v164_v5  ;;  %v2038_v5 = vrot.slane %v258_v3, %v262_v2 }
  0xbe   :  { %442 = vmatprep.mubr.f32.mxu0 %v167_v6  ;;  %v2042_v6 = vrot.slane %v258_v3, %v266_v4 }
  0xc1   :  { %443 = vmatmul.mubr.f32.gmra.mrb[36].mxu0 %v166_v7 }
  0xc2   :  { %448 = vmatprep.mubr.f32.mxu0 %v169_v8 }
  0xc5   :  { %449 = vmatmul.mubr.f32.gmra.mrb[38].mxu0 %v168_v9 }
  0xc6   :  { %454 = vmatprep.mubr.f32.mxu0 %v171_v10 }
  0xc9   :  { %455 = vmatmul.mubr.f32.gmra.mrb[40].mxu0 %v170_v11 }
  0xca   :  { %460 = vmatprep.mubr.f32.mxu0 %v173_v12 }
  0xcd   :  { %461 = vmatmul.mubr.f32.gmra.mrb[42].mxu0 %v172_v13 }
  0xce   :  { %466 = vmatprep.mubr.f32.mxu0 %v175_v14 }
  0xd1   :  { %467 = vmatmul.mubr.f32.gmra.mrb[44].mxu0 %v174_v21 }
  0xd2   :  { %472 = vmatprep.mubr.f32.mxu0 %v177_v22 }
  0xd5   :  { %473 = vmatmul.mubr.f32.gmra.mrb[46].mxu0 %v176_v29 }
  0xd6   :  { %478 = vmatprep.mubr.f32.mxu0 %v179_v30 }
  0xd9   :  { %479 = vmatmul.mubr.f32.gmra.mrb[48].mxu0 %v178_v37 }
  0xda   :  { %484 = vmatprep.mubr.f32.mxu0 %v181_v38 }
  0xdd   :  { %485 = vmatmul.mubr.f32.gmra.mrb[50].mxu0 %v180_v45 }
  0xde   :  { %490 = vmatprep.mubr.f32.mxu0 %v183_v46 }
  0xe1   :  { %491 = vmatmul.mubr.f32.gmra.mrb[52].mxu0 %v182_v53 }
  0xe2   :  { %496 = vmatprep.mubr.f32.mxu0 %v185_v54 }
  0xe5   :  { %497 = vmatmul.mubr.f32.gmra.mrb[54].mxu0 %v184_v55 }
  0xe6   :  { %502 = vmatprep.mubr.f32.mxu0 %v187_v56 }
  0xe9   :  { %503 = vmatmul.mubr.f32.gmra.mrb[56].mxu0 %v186_v57 }
  0xea   :  { %508 = vmatprep.mubr.f32.mxu0 %v189_v58 }
  0xed   :  { %509 = vmatmul.mubr.f32.gmra.mrb[58].mxu0 %v188_v59 }
  0xee   :  { %514 = vmatprep.mubr.f32.mxu0 %v191_v60 }
  0xf1   :  { %515 = vmatmul.mubr.f32.gmra.mrb[60].mxu0 %v190_v61 }
  0xf2   :  { %520 = vmatprep.mubr.f32.mxu0 %v193_v62 }
  0xf5   :  { %521 = vmatmul.mubr.f32.gmra.mrb[62].mxu0 %v192_v63 }
 0x14c   :  { %v336_v7 = vpop.f32.mrb[0].mxu0 }
 0x14d   :  { %v337_v8 = vadd.f32 %v336_v7, %v2038_v5  ;;  %v338_v9 = vpop.f32.mrb[1].mxu0 }
 0x14e   :  { %v339_v10 = vadd.f32 %v338_v9, %v2042_v6 }
 0x14f   :  { %v591_v11 = vmul.f32 0.70710677, %v337_v8  ;;  %v527_v39 = vmul.f32 0.5, %v337_v8 }
 0x150   :  { %v592_v12 = vmul.f32 0.70710677, %v339_v10  ;;  %v342_v13 = vpop.f32.mrb[2].mxu0  ;;  %v528_v37 = vmul.f32 0.5, %v339_v10 }
 0x151   :  { %1719 = verf.f32 %v591_v11  ;;  %v343_v14 = vadd.f32 %v342_v13, %v2038_v5  ;;  %v344_v15 = vpop.f32.mrb[3].mxu0 }
 0x152   :  { %1721 = verf.f32 %v592_v12  ;;  %v345_v16 = vadd.f32 %v344_v15, %v2042_v6 }
 0x153   :  { %v593_v17 = vmul.f32 0.70710677, %v343_v14  ;;  %v529_v53 = vmul.f32 0.5, %v343_v14 }
 0x154   :  { %v594_v18 = vmul.f32 0.70710677, %v345_v16  ;;  %v348_v19 = vpop.f32.mrb[4].mxu0  ;;  %v530_v49 = vmul.f32 0.5, %v345_v16 }
 0x155   :  { %1723 = verf.f32 %v593_v17  ;;  %v349_v20 = vadd.f32 %v348_v19, %v2038_v5  ;;  %v350_v21 = vpop.f32.mrb[5].mxu0 }
 0x156   :  { %1725 = verf.f32 %v594_v18  ;;  %v351_v22 = vadd.f32 %v350_v21, %v2042_v6 }
 0x157   :  { %v595_v23 = vmul.f32 0.70710677, %v349_v20  ;;  %v531_v8 = vmul.f32 0.5, %v349_v20 }
 0x158   :  { %v596_v24 = vmul.f32 0.70710677, %v351_v22  ;;  %v354_v25 = vpop.f32.mrb[6].mxu0  ;;  %v532_v63 = vmul.f32 0.5, %v351_v22 }
 0x159   :  { %1727 = verf.f32 %v595_v23  ;;  %v2051_v26 = vadd.f32 %v354_v25, %v2038_v5  ;;  %v356_v27 = vpop.f32.mrb[7].mxu0 }
 0x15a   :  { %1729 = verf.f32 %v596_v24  ;;  %v357_v28 = vadd.f32 %v356_v27, %v2042_v6 }
 0x15b   :  { %v1720_v29 = vpop.eup %1719  ;;  %v597_v30 = vmul.f32 0.70710677, %v2051_v26  ;;  %v533_v22 = vmul.f32 0.5, %v2051_v26 }
 0x15c   :  { %v1722_v31 = vpop.eup %1721  ;;  %v719_v32 = vadd.f32 1.0, %v1720_v29  ;;  %v598_v33 = vmul.f32 0.70710677, %v357_v28  ;;  %v360_v34 = vpop.f32.mrb[8].mxu0  ;;  %v534_v18 = vmul.f32 0.5, %v357_v28 }
 0x15d   :  { %1731 = verf.f32 %v597_v30  ;;  %v2056_v35 = vadd.f32 %v360_v34, %v2038_v5  ;;  %v362_v36 = vpop.f32.mrb[9].mxu0  ;;  %v720_v38 = vadd.f32 1.0, %v1722_v31 }
 0x15e   :  { %1733 = verf.f32 %v598_v33  ;;  %v2059_v40 = vadd.f32 %v362_v36, %v2042_v6  ;;  %v783_v48 = vmul.f32 %v719_v32, %v527_v39 }
 0x15f   :  { %v1724_v41 = vpop.eup %1723  ;;  %v599_v42 = vmul.f32 0.70710677, %v2056_v35  ;;  %v784_v43 = vmul.f32 %v720_v38, %v528_v37  ;;  %v535_v37 = vmul.f32 0.5, %v2056_v35 }
 0x160   :  { %v1726_v44 = vpop.eup %1725  ;;  %v721_v45 = vadd.f32 1.0, %v1724_v41  ;;  %v600_v46 = vmul.f32 0.70710677, %v2059_v40  ;;  %v366_v47 = vpop.f32.mrb[10].mxu0  ;;  %v536_v33 = vmul.f32 0.5, %v2059_v40 }
 0x161   :  { %v722_v50 = vadd.f32 1.0, %v1726_v44  ;;  %1735 = verf.f32 %v599_v42  ;;  %v2064_v51 = vadd.f32 %v366_v47, %v2038_v5  ;;  %v368_v52 = vpop.f32.mrb[11].mxu0  ;;  %1039 = vmatprep.mubr.f32.mxu1 %v784_v43 }
 0x162   :  { %1737 = verf.f32 %v600_v46  ;;  %v2067_v54 = vadd.f32 %v368_v52, %v2042_v6  ;;  %1040 = vmatmul.mubr.f32.vlgmr.msra.gmra.mrb[0].mxu1 %v783_v48  ;;  %v785_v62 = vmul.f32 %v721_v45, %v529_v53 }
 0x163   :  { %v1728_v55 = vpop.eup %1727  ;;  %v601_v56 = vmul.f32 0.70710677, %v2064_v51  ;;  %v786_v57 = vmul.f32 %v722_v50, %v530_v49  ;;  %v537_v50 = vmul.f32 0.5, %v2064_v51 }
 0x164   :  { %v1730_v58 = vpop.eup %1729  ;;  %v723_v59 = vadd.f32 1.0, %v1728_v55  ;;  %v602_v60 = vmul.f32 0.70710677, %v2067_v54  ;;  %v372_v61 = vpop.f32.mrb[12].mxu0  ;;  %v538_v47 = vmul.f32 0.5, %v2067_v54 }
 0x165   :  { %v724_v0 = vadd.f32 1.0, %v1730_v58  ;;  %1739 = verf.f32 %v601_v56  ;;  %v2072_v3 = vadd.f32 %v372_v61, %v2038_v5  ;;  %v374_v7 = vpop.f32.mrb[13].mxu0  ;;  %1045 = vmatprep.mubr.f32.mxu1 %v786_v57 }
 0x166   :  { %1741 = verf.f32 %v602_v60  ;;  %v2075_v9 = vadd.f32 %v374_v7, %v2042_v6  ;;  %1046 = vmatmul.mubr.f32.gmra.mrb[2].mxu1 %v785_v62  ;;  %v787_v17 = vmul.f32 %v723_v59, %v531_v8 }
 0x167   :  { %v1732_v10 = vpop.eup %1731  ;;  %v603_v11 = vmul.f32 0.70710677, %v2072_v3  ;;  %v788_v12 = vmul.f32 %v724_v0, %v532_v63  ;;  %v539_v0 = vmul.f32 0.5, %v2072_v3 }
 0x168   :  { %v1734_v13 = vpop.eup %1733  ;;  %v725_v14 = vadd.f32 1.0, %v1732_v10  ;;  %v604_v15 = vmul.f32 0.70710677, %v2075_v9  ;;  %v378_v16 = vpop.f32.mrb[14].mxu0  ;;  %v540_v61 = vmul.f32 0.5, %v2075_v9 }
 0x169   :  { %v726_v19 = vadd.f32 1.0, %v1734_v13  ;;  %1743 = verf.f32 %v603_v11  ;;  %v2080_v20 = vadd.f32 %v378_v16, %v2038_v5  ;;  %v380_v21 = vpop.f32.mrb[15].mxu0  ;;  %1051 = vmatprep.mubr.f32.mxu1 %v788_v12 }
 0x16a   :  { %1745 = verf.f32 %v604_v15  ;;  %v2084_v23 = vadd.f32 %v380_v21, %v2042_v6  ;;  %1052 = vmatmul.mubr.f32.gmra.mrb[4].mxu1 %v787_v17  ;;  %v789_v32 = vmul.f32 %v725_v14, %v533_v22 }
 0x16b   :  { %v1736_v24 = vpop.eup %1735  ;;  %v605_v25 = vmul.f32 0.70710677, %v2080_v20  ;;  %v790_v27 = vmul.f32 %v726_v19, %v534_v18  ;;  %v541_v19 = vmul.f32 0.5, %v2080_v20 }
 0x16c   :  { %v1738_v29 = vpop.eup %1737  ;;  %v727_v28 = vadd.f32 1.0, %v1736_v24  ;;  %v606_v30 = vmul.f32 0.70710677, %v2084_v23  ;;  %v384_v31 = vpop.f32.mrb[16].mxu0  ;;  %v542_v16 = vmul.f32 0.5, %v2084_v23 }
 0x16d   :  { %v728_v34 = vadd.f32 1.0, %v1738_v29  ;;  %1747 = verf.f32 %v605_v25  ;;  %v2090_v26 = vadd.f32 %v384_v31, %v2038_v5  ;;  %v386_v36 = vpop.f32.mrb[17].mxu0  ;;  %1057 = vmatprep.mubr.f32.mxu1 %v790_v27 }
 0x16e   :  { %1749 = verf.f32 %v606_v30  ;;  %v2094_v38 = vadd.f32 %v386_v36, %v2042_v6  ;;  %1058 = vmatmul.mubr.f32.gmra.mrb[6].mxu1 %v789_v32  ;;  %v791_v46 = vmul.f32 %v727_v28, %v535_v37 }
 0x16f   :  { %v1740_v39 = vpop.eup %1739  ;;  %v607_v41 = vmul.f32 0.70710677, %v2090_v26  ;;  %v792_v42 = vmul.f32 %v728_v34, %v536_v33  ;;  %v543_v34 = vmul.f32 0.5, %v2090_v26 }
 0x170   :  { %v1742_v43 = vpop.eup %1741  ;;  %v729_v40 = vadd.f32 1.0, %v1740_v39  ;;  %v608_v44 = vmul.f32 0.70710677, %v2094_v38  ;;  %v390_v45 = vpop.f32.mrb[18].mxu0  ;;  %v544_v31 = vmul.f32 0.5, %v2094_v38 }
 0x171   :  { %v730_v48 = vadd.f32 1.0, %v1742_v43  ;;  %1751 = verf.f32 %v607_v41  ;;  %v2100_v35 = vadd.f32 %v390_v45, %v2038_v5  ;;  %v392_v49 = vpop.f32.mrb[19].mxu0  ;;  %1063 = vmatprep.mubr.f32.mxu1 %v792_v42 }
 0x172   :  { %1753 = verf.f32 %v608_v44  ;;  %v2104_v52 = vadd.f32 %v392_v49, %v2042_v6  ;;  %1064 = vmatmul.mubr.f32.gmra.mrb[8].mxu1 %v791_v46  ;;  %v793_v60 = vmul.f32 %v729_v40, %v537_v50 }
 0x173   :  { %v1744_v53 = vpop.eup %1743  ;;  %v609_v55 = vmul.f32 0.70710677, %v2100_v35  ;;  %v794_v56 = vmul.f32 %v730_v48, %v538_v47  ;;  %v545_v48 = vmul.f32 0.5, %v2100_v35 }
 0x174   :  { %v1746_v57 = vpop.eup %1745  ;;  %v731_v54 = vadd.f32 1.0, %v1744_v53  ;;  %v610_v58 = vmul.f32 0.70710677, %v2104_v52  ;;  %v396_v59 = vpop.f32.mrb[20].mxu0  ;;  %v546_v45 = vmul.f32 0.5, %v2104_v52 }
 0x175   :  { %v732_v62 = vadd.f32 1.0, %v1746_v57  ;;  %1755 = verf.f32 %v609_v55  ;;  %v2110_v51 = vadd.f32 %v396_v59, %v2038_v5  ;;  %v398_v63 = vpop.f32.mrb[21].mxu0  ;;  %1069 = vmatprep.mubr.f32.mxu1 %v794_v56 }
 0x176   :  { %1757 = verf.f32 %v610_v58  ;;  %v2114_v7 = vadd.f32 %v398_v63, %v2042_v6  ;;  %1070 = vmatmul.mubr.f32.gmra.mrb[10].mxu1 %v793_v60  ;;  %v795_v15 = vmul.f32 %v731_v54, %v539_v0 }
 0x177   :  { %v1748_v8 = vpop.eup %1747  ;;  %v611_v10 = vmul.f32 0.70710677, %v2110_v51  ;;  %v796_v11 = vmul.f32 %v732_v62, %v540_v61  ;;  %v547_v62 = vmul.f32 0.5, %v2110_v51 }
 0x178   :  { %v1750_v12 = vpop.eup %1749  ;;  %v733_v9 = vadd.f32 1.0, %v1748_v8  ;;  %v612_v13 = vmul.f32 0.70710677, %v2114_v7  ;;  %v402_v14 = vpop.f32.mrb[22].mxu0  ;;  %v548_v59 = vmul.f32 0.5, %v2114_v7 }
 0x179   :  { %v734_v17 = vadd.f32 1.0, %v1750_v12  ;;  %1759 = verf.f32 %v611_v10  ;;  %v2120_v3 = vadd.f32 %v402_v14, %v2038_v5  ;;  %v404_v18 = vpop.f32.mrb[23].mxu0  ;;  %1075 = vmatprep.mubr.f32.mxu1 %v796_v11 }
 0x17a   :  { %1761 = verf.f32 %v612_v13  ;;  %v2124_v21 = vadd.f32 %v404_v18, %v2042_v6  ;;  %1076 = vmatmul.mubr.f32.gmra.mrb[12].mxu1 %v795_v15  ;;  %v797_v30 = vmul.f32 %v733_v9, %v541_v19 }
 0x17b   :  { %v1752_v22 = vpop.eup %1751  ;;  %v613_v24 = vmul.f32 0.70710677, %v2120_v3  ;;  %v798_v25 = vmul.f32 %v734_v17, %v542_v16  ;;  %v549_v17 = vmul.f32 0.5, %v2120_v3 }
 0x17c   :  { %v1754_v27 = vpop.eup %1753  ;;  %v735_v23 = vadd.f32 1.0, %v1752_v22  ;;  %v614_v29 = vmul.f32 0.70710677, %v2124_v21  ;;  %v408_v28 = vpop.f32.mrb[24].mxu0  ;;  %v550_v14 = vmul.f32 0.5, %v2124_v21 }
 0x17d   :  { %v736_v32 = vadd.f32 1.0, %v1754_v27  ;;  %1763 = verf.f32 %v613_v24  ;;  %v2130_v20 = vadd.f32 %v408_v28, %v2038_v5  ;;  %v410_v33 = vpop.f32.mrb[25].mxu0  ;;  %1081 = vmatprep.mubr.f32.mxu1 %v798_v25 }
 0x17e   :  { %1765 = verf.f32 %v614_v29  ;;  %v2134_v36 = vadd.f32 %v410_v33, %v2042_v6  ;;  %1082 = vmatmul.mubr.f32.gmra.mrb[14].mxu1 %v797_v30  ;;  %v799_v44 = vmul.f32 %v735_v23, %v543_v34 }
 0x17f   :  { %v1756_v37 = vpop.eup %1755  ;;  %v615_v39 = vmul.f32 0.70710677, %v2130_v20  ;;  %v800_v41 = vmul.f32 %v736_v32, %v544_v31  ;;  %v551_v32 = vmul.f32 0.5, %v2130_v20 }
 0x180   :  { %v1758_v42 = vpop.eup %1757  ;;  %v737_v38 = vadd.f32 1.0, %v1756_v37  ;;  %v616_v43 = vmul.f32 0.70710677, %v2134_v36  ;;  %v414_v40 = vpop.f32.mrb[26].mxu0  ;;  %v552_v28 = vmul.f32 0.5, %v2134_v36 }
 0x181   :  { %v738_v46 = vadd.f32 1.0, %v1758_v42  ;;  %1767 = verf.f32 %v615_v39  ;;  %v2140_v26 = vadd.f32 %v414_v40, %v2038_v5  ;;  %v416_v47 = vpop.f32.mrb[27].mxu0  ;;  %1087 = vmatprep.mubr.f32.mxu1 %v800_v41 }
 0x182   :  { %1769 = verf.f32 %v616_v43  ;;  %v2144_v49 = vadd.f32 %v416_v47, %v2042_v6  ;;  %1088 = vmatmul.mubr.f32.gmra.mrb[16].mxu1 %v799_v44  ;;  %v801_v58 = vmul.f32 %v737_v38, %v545_v48 }
 0x183   :  { %v1760_v50 = vpop.eup %1759  ;;  %v617_v53 = vmul.f32 0.70710677, %v2140_v26  ;;  %v802_v55 = vmul.f32 %v738_v46, %v546_v45  ;;  %v553_v46 = vmul.f32 0.5, %v2140_v26 }
 0x184   :  { %v1762_v56 = vpop.eup %1761  ;;  %v739_v52 = vadd.f32 1.0, %v1760_v50  ;;  %v618_v57 = vmul.f32 0.70710677, %v2144_v49  ;;  %v420_v54 = vpop.f32.mrb[28].mxu0  ;;  %v554_v40 = vmul.f32 0.5, %v2144_v49 }
 0x185   :  { %v740_v60 = vadd.f32 1.0, %v1762_v56  ;;  %1771 = verf.f32 %v617_v53  ;;  %v2150_v35 = vadd.f32 %v420_v54, %v2038_v5  ;;  %v422_v61 = vpop.f32.mrb[29].mxu0  ;;  %1093 = vmatprep.mubr.f32.mxu1 %v802_v55 }
 0x186   :  { %1773 = verf.f32 %v618_v57  ;;  %v2154_v63 = vadd.f32 %v422_v61, %v2042_v6  ;;  %1094 = vmatmul.mubr.f32.gmra.mrb[18].mxu1 %v801_v58  ;;  %v803_v13 = vmul.f32 %v739_v52, %v547_v62 }
 0x187   :  { %v1764_v0 = vpop.eup %1763  ;;  %v619_v8 = vmul.f32 0.70710677, %v2150_v35  ;;  %v804_v10 = vmul.f32 %v740_v60, %v548_v59  ;;  %v555_v60 = vmul.f32 0.5, %v2150_v35 }
 0x188   :  { %v1766_v11 = vpop.eup %1765  ;;  %v741_v7 = vadd.f32 1.0, %v1764_v0  ;;  %v620_v12 = vmul.f32 0.70710677, %v2154_v63  ;;  %v426_v9 = vpop.f32.mrb[30].mxu0  ;;  %v556_v54 = vmul.f32 0.5, %v2154_v63 }
 0x189   :  { %v742_v15 = vadd.f32 1.0, %v1766_v11  ;;  %1775 = verf.f32 %v619_v8  ;;  %v2160_v51 = vadd.f32 %v426_v9, %v2038_v5  ;;  %v428_v16 = vpop.f32.mrb[31].mxu0  ;;  %1099 = vmatprep.mubr.f32.mxu1 %v804_v10 }
 0x18a   :  { %1777 = verf.f32 %v620_v12  ;;  %v2164_v18 = vadd.f32 %v428_v16, %v2042_v6  ;;  %1100 = vmatmul.mubr.f32.gmra.mrb[20].mxu1 %v803_v13  ;;  %v805_v29 = vmul.f32 %v741_v7, %v549_v17 }
 0x18b   :  { %v1768_v19 = vpop.eup %1767  ;;  %v621_v22 = vmul.f32 0.70710677, %v2160_v51  ;;  %v806_v24 = vmul.f32 %v742_v15, %v550_v14  ;;  %v557_v15 = vmul.f32 0.5, %v2160_v51 }
 0x18c   :  { %v1770_v25 = vpop.eup %1769  ;;  %v743_v21 = vadd.f32 1.0, %v1768_v19  ;;  %v622_v27 = vmul.f32 0.70710677, %v2164_v18  ;;  %v432_v23 = vpop.f32.mrb[32].mxu0  ;;  %v558_v9 = vmul.f32 0.5, %v2164_v18 }
 0x18d   :  { %v744_v30 = vadd.f32 1.0, %v1770_v25  ;;  %1779 = verf.f32 %v621_v22  ;;  %v2170_v3 = vadd.f32 %v432_v23, %v2038_v5  ;;  %v434_v31 = vpop.f32.mrb[33].mxu0  ;;  %1105 = vmatprep.mubr.f32.mxu1 %v806_v24 }
 0x18e   :  { %1781 = verf.f32 %v622_v27  ;;  %v2174_v33 = vadd.f32 %v434_v31, %v2042_v6  ;;  %1106 = vmatmul.mubr.f32.gmra.mrb[22].mxu1 %v805_v29  ;;  %v807_v43 = vmul.f32 %v743_v21, %v551_v32 }
 0x18f   :  { %v1772_v34 = vpop.eup %1771  ;;  %v623_v37 = vmul.f32 0.70710677, %v2170_v3  ;;  %v808_v39 = vmul.f32 %v744_v30, %v552_v28  ;;  %v559_v30 = vmul.f32 0.5, %v2170_v3 }
 0x190   :  { %v1774_v41 = vpop.eup %1773  ;;  %v745_v36 = vadd.f32 1.0, %v1772_v34  ;;  %v624_v42 = vmul.f32 0.70710677, %v2174_v33  ;;  %v438_v38 = vpop.f32.mrb[34].mxu0  ;;  %v560_v23 = vmul.f32 0.5, %v2174_v33 }
 0x191   :  { %v746_v44 = vadd.f32 1.0, %v1774_v41  ;;  %1783 = verf.f32 %v623_v37  ;;  %v2180_v20 = vadd.f32 %v438_v38, %v2038_v5  ;;  %v440_v45 = vpop.f32.mrb[35].mxu0  ;;  %1111 = vmatprep.mubr.f32.mxu1 %v808_v39 }
 0x192   :  { %1785 = verf.f32 %v624_v42  ;;  %v2184_v47 = vadd.f32 %v440_v45, %v2042_v6  ;;  %1112 = vmatmul.mubr.f32.gmra.mrb[24].mxu1 %v807_v43  ;;  %v809_v57 = vmul.f32 %v745_v36, %v553_v46 }
 0x193   :  { %v1776_v48 = vpop.eup %1775  ;;  %v625_v50 = vmul.f32 0.70710677, %v2180_v20  ;;  %v810_v53 = vmul.f32 %v746_v44, %v554_v40  ;;  %v561_v44 = vmul.f32 0.5, %v2180_v20 }
 0x194   :  { %v1778_v55 = vpop.eup %1777  ;;  %v747_v49 = vadd.f32 1.0, %v1776_v48  ;;  %v626_v56 = vmul.f32 0.70710677, %v2184_v47  ;;  %v444_v52 = vpop.f32.mrb[36].mxu0  ;;  %v562_v38 = vmul.f32 0.5, %v2184_v47 }
 0x195   :  { %v748_v58 = vadd.f32 1.0, %v1778_v55  ;;  %1787 = verf.f32 %v625_v50  ;;  %v2190_v26 = vadd.f32 %v444_v52, %v2038_v5  ;;  %v446_v59 = vpop.f32.mrb[37].mxu0  ;;  %1117 = vmatprep.mubr.f32.mxu1 %v810_v53 }
 0x196   :  { %1789 = verf.f32 %v626_v56  ;;  %v2194_v61 = vadd.f32 %v446_v59, %v2042_v6  ;;  %1118 = vmatmul.mubr.f32.gmra.mrb[26].mxu1 %v809_v57  ;;  %v811_v12 = vmul.f32 %v747_v49, %v555_v60 }
 0x197   :  { %v1780_v62 = vpop.eup %1779  ;;  %v627_v0 = vmul.f32 0.70710677, %v2190_v26  ;;  %v812_v8 = vmul.f32 %v748_v58, %v556_v54  ;;  %v563_v58 = vmul.f32 0.5, %v2190_v26 }
 0x198   :  { %v1782_v10 = vpop.eup %1781  ;;  %v749_v63 = vadd.f32 1.0, %v1780_v62  ;;  %v628_v11 = vmul.f32 0.70710677, %v2194_v61  ;;  %v450_v7 = vpop.f32.mrb[38].mxu0  ;;  %v564_v52 = vmul.f32 0.5, %v2194_v61 }
 0x199   :  { %v750_v13 = vadd.f32 1.0, %v1782_v10  ;;  %1791 = verf.f32 %v627_v0  ;;  %v2200_v35 = vadd.f32 %v450_v7, %v2038_v5  ;;  %v452_v14 = vpop.f32.mrb[39].mxu0  ;;  %1123 = vmatprep.mubr.f32.mxu1 %v812_v8 }
 0x19a   :  { %1793 = verf.f32 %v628_v11  ;;  %v2204_v16 = vadd.f32 %v452_v14, %v2042_v6  ;;  %1124 = vmatmul.mubr.f32.gmra.mrb[28].mxu1 %v811_v12  ;;  %v813_v27 = vmul.f32 %v749_v63, %v557_v15 }
 0x19b   :  { %v1784_v17 = vpop.eup %1783  ;;  %v629_v19 = vmul.f32 0.70710677, %v2200_v35  ;;  %v814_v22 = vmul.f32 %v750_v13, %v558_v9  ;;  %v565_v13 = vmul.f32 0.5, %v2200_v35 }
 0x19c   :  { %v1786_v24 = vpop.eup %1785  ;;  %v751_v18 = vadd.f32 1.0, %v1784_v17  ;;  %v630_v25 = vmul.f32 0.70710677, %v2204_v16  ;;  %v456_v21 = vpop.f32.mrb[40].mxu0  ;;  %v566_v7 = vmul.f32 0.5, %v2204_v16 }
 0x19d   :  { %v752_v29 = vadd.f32 1.0, %v1786_v24  ;;  %1795 = verf.f32 %v629_v19  ;;  %v2210_v51 = vadd.f32 %v456_v21, %v2038_v5  ;;  %v458_v28 = vpop.f32.mrb[41].mxu0  ;;  %1129 = vmatprep.mubr.f32.mxu1 %v814_v22 }
 0x19e   :  { %1797 = verf.f32 %v630_v25  ;;  %v2214_v31 = vadd.f32 %v458_v28, %v2042_v6  ;;  %1130 = vmatmul.mubr.f32.gmra.mrb[30].mxu1 %v813_v27  ;;  %v815_v42 = vmul.f32 %v751_v18, %v559_v30 }
 0x19f   :  { %v1788_v32 = vpop.eup %1787  ;;  %v631_v34 = vmul.f32 0.70710677, %v2210_v51  ;;  %v816_v37 = vmul.f32 %v752_v29, %v560_v23  ;;  %v567_v29 = vmul.f32 0.5, %v2210_v51 }
 0x1a0   :  { %v1790_v39 = vpop.eup %1789  ;;  %v753_v33 = vadd.f32 1.0, %v1788_v32  ;;  %v632_v41 = vmul.f32 0.70710677, %v2214_v31  ;;  %v462_v36 = vpop.f32.mrb[42].mxu0  ;;  %v568_v21 = vmul.f32 0.5, %v2214_v31 }
 0x1a1   :  { %v754_v43 = vadd.f32 1.0, %v1790_v39  ;;  %1799 = verf.f32 %v631_v34  ;;  %v2220_v3 = vadd.f32 %v462_v36, %v2038_v5  ;;  %v464_v40 = vpop.f32.mrb[43].mxu0  ;;  %1135 = vmatprep.mubr.f32.mxu1 %v816_v37 }
 0x1a2   :  { %1801 = verf.f32 %v632_v41  ;;  %v2224_v45 = vadd.f32 %v464_v40, %v2042_v6  ;;  %1136 = vmatmul.mubr.f32.gmra.mrb[32].mxu1 %v815_v42  ;;  %v817_v56 = vmul.f32 %v753_v33, %v561_v44 }
 0x1a3   :  { %v1792_v46 = vpop.eup %1791  ;;  %v633_v48 = vmul.f32 0.70710677, %v2220_v3  ;;  %v818_v50 = vmul.f32 %v754_v43, %v562_v38  ;;  %v569_v43 = vmul.f32 0.5, %v2220_v3 }
 0x1a4   :  { %v1794_v53 = vpop.eup %1793  ;;  %v755_v47 = vadd.f32 1.0, %v1792_v46  ;;  %v634_v55 = vmul.f32 0.70710677, %v2224_v45  ;;  %v468_v49 = vpop.f32.mrb[44].mxu0  ;;  %v570_v36 = vmul.f32 0.5, %v2224_v45 }
 0x1a5   :  { %v756_v57 = vadd.f32 1.0, %v1794_v53  ;;  %1803 = verf.f32 %v633_v48  ;;  %v2230_v20 = vadd.f32 %v468_v49, %v2038_v5  ;;  %v470_v54 = vpop.f32.mrb[45].mxu0  ;;  %1141 = vmatprep.mubr.f32.mxu1 %v818_v50 }
 0x1a6   :  { %1805 = verf.f32 %v634_v55  ;;  %v2234_v59 = vadd.f32 %v470_v54, %v2042_v6  ;;  %1142 = vmatmul.mubr.f32.gmra.mrb[34].mxu1 %v817_v56  ;;  %v819_v11 = vmul.f32 %v755_v47, %v563_v58 }
 0x1a7   :  { %v1796_v60 = vpop.eup %1795  ;;  %v635_v62 = vmul.f32 0.70710677, %v2230_v20  ;;  %v820_v0 = vmul.f32 %v756_v57, %v564_v52  ;;  %v571_v57 = vmul.f32 0.5, %v2230_v20 }
 0x1a8   :  { %v1798_v8 = vpop.eup %1797  ;;  %v757_v61 = vadd.f32 1.0, %v1796_v60  ;;  %v636_v10 = vmul.f32 0.70710677, %v2234_v59  ;;  %v474_v63 = vpop.f32.mrb[46].mxu0  ;;  %v572_v49 = vmul.f32 0.5, %v2234_v59 }
 0x1a9   :  { %v758_v12 = vadd.f32 1.0, %v1798_v8  ;;  %1807 = verf.f32 %v635_v62  ;;  %v2240_v26 = vadd.f32 %v474_v63, %v2038_v5  ;;  %v476_v9 = vpop.f32.mrb[47].mxu0  ;;  %1147 = vmatprep.mubr.f32.mxu1 %v820_v0 }
 0x1aa   :  { %1809 = verf.f32 %v636_v10  ;;  %v2244_v14 = vadd.f32 %v476_v9, %v2042_v6  ;;  %1148 = vmatmul.mubr.f32.gmra.mrb[36].mxu1 %v819_v11  ;;  %v821_v25 = vmul.f32 %v757_v61, %v565_v13 }
 0x1ab   :  { %v1800_v15 = vpop.eup %1799  ;;  %v637_v17 = vmul.f32 0.70710677, %v2240_v26  ;;  %v822_v19 = vmul.f32 %v758_v12, %v566_v7  ;;  %v573_v12 = vmul.f32 0.5, %v2240_v26 }
 0x1ac   :  { %v1802_v22 = vpop.eup %1801  ;;  %v759_v16 = vadd.f32 1.0, %v1800_v15  ;;  %v638_v24 = vmul.f32 0.70710677, %v2244_v14  ;;  %v480_v18 = vpop.f32.mrb[48].mxu0  ;;  %v574_v63 = vmul.f32 0.5, %v2244_v14 }
 0x1ad   :  { %v760_v27 = vadd.f32 1.0, %v1802_v22  ;;  %1811 = verf.f32 %v637_v17  ;;  %v2250_v35 = vadd.f32 %v480_v18, %v2038_v5  ;;  %v482_v23 = vpop.f32.mrb[49].mxu0  ;;  %1153 = vmatprep.mubr.f32.mxu1 %v822_v19 }
 0x1ae   :  { %1813 = verf.f32 %v638_v24  ;;  %v2254_v28 = vadd.f32 %v482_v23, %v2042_v6  ;;  %1154 = vmatmul.mubr.f32.gmra.mrb[38].mxu1 %v821_v25  ;;  %v823_v41 = vmul.f32 %v759_v16, %v567_v29 }
 0x1af   :  { %v1804_v30 = vpop.eup %1803  ;;  %v639_v32 = vmul.f32 0.70710677, %v2250_v35  ;;  %v824_v34 = vmul.f32 %v760_v27, %v568_v21  ;;  %v575_v27 = vmul.f32 0.5, %v2250_v35 }
 0x1b0   :  { %v1806_v37 = vpop.eup %1805  ;;  %v761_v31 = vadd.f32 1.0, %v1804_v30  ;;  %v640_v39 = vmul.f32 0.70710677, %v2254_v28  ;;  %v486_v33 = vpop.f32.mrb[50].mxu0  ;;  %v576_v18 = vmul.f32 0.5, %v2254_v28 }
 0x1b1   :  { %v762_v42 = vadd.f32 1.0, %v1806_v37  ;;  %1815 = verf.f32 %v639_v32  ;;  %v2260_v51 = vadd.f32 %v486_v33, %v2038_v5  ;;  %v488_v38 = vpop.f32.mrb[51].mxu0  ;;  %1159 = vmatprep.mubr.f32.mxu1 %v824_v34 }
 0x1b2   :  { %1817 = verf.f32 %v640_v39  ;;  %v2264_v40 = vadd.f32 %v488_v38, %v2042_v6  ;;  %1160 = vmatmul.mubr.f32.gmra.mrb[40].mxu1 %v823_v41  ;;  %v825_v55 = vmul.f32 %v761_v31, %v569_v43 }
 0x1b3   :  { %v1808_v44 = vpop.eup %1807  ;;  %v641_v46 = vmul.f32 0.70710677, %v2260_v51  ;;  %v826_v48 = vmul.f32 %v762_v42, %v570_v36  ;;  %v577_v42 = vmul.f32 0.5, %v2260_v51 }
 0x1b4   :  { %v1810_v50 = vpop.eup %1809  ;;  %v763_v45 = vadd.f32 1.0, %v1808_v44  ;;  %v642_v53 = vmul.f32 0.70710677, %v2264_v40  ;;  %v492_v47 = vpop.f32.mrb[52].mxu0  ;;  %v578_v33 = vmul.f32 0.5, %v2264_v40 }
 0x1b5   :  { %v764_v56 = vadd.f32 1.0, %v1810_v50  ;;  %1819 = verf.f32 %v641_v46  ;;  %v2270_v3 = vadd.f32 %v492_v47, %v2038_v5  ;;  %v494_v52 = vpop.f32.mrb[53].mxu0  ;;  %1165 = vmatprep.mubr.f32.mxu1 %v826_v48 }
 0x1b6   :  { %1821 = verf.f32 %v642_v53  ;;  %v2274_v54 = vadd.f32 %v494_v52, %v2042_v6  ;;  %1166 = vmatmul.mubr.f32.gmra.mrb[42].mxu1 %v825_v55  ;;  %v827_v10 = vmul.f32 %v763_v45, %v571_v57 }
 0x1b7   :  { %v1812_v58 = vpop.eup %1811  ;;  %v643_v60 = vmul.f32 0.70710677, %v2270_v3  ;;  %v828_v62 = vmul.f32 %v764_v56, %v572_v49  ;;  %v579_v56 = vmul.f32 0.5, %v2270_v3 }
 0x1b8   :  { %v1814_v0 = vpop.eup %1813  ;;  %v765_v59 = vadd.f32 1.0, %v1812_v58  ;;  %v644_v8 = vmul.f32 0.70710677, %v2274_v54  ;;  %v498_v61 = vpop.f32.mrb[54].mxu0  ;;  %v580_v47 = vmul.f32 0.5, %v2274_v54 }
 0x1b9   :  { %v766_v11 = vadd.f32 1.0, %v1814_v0  ;;  %1823 = verf.f32 %v643_v60  ;;  %v2280_v20 = vadd.f32 %v498_v61, %v2038_v5  ;;  %v500_v7 = vpop.f32.mrb[55].mxu0  ;;  %1171 = vmatprep.mubr.f32.mxu1 %v828_v62 }
 0x1ba   :  { %1825 = verf.f32 %v644_v8  ;;  %v2284_v9 = vadd.f32 %v500_v7, %v2042_v6  ;;  %1172 = vmatmul.mubr.f32.gmra.mrb[44].mxu1 %v827_v10  ;;  %v829_v24 = vmul.f32 %v765_v59, %v573_v12 }
 0x1bb   :  { %v1816_v13 = vpop.eup %1815  ;;  %v645_v15 = vmul.f32 0.70710677, %v2280_v20  ;;  %v830_v17 = vmul.f32 %v766_v11, %v574_v63  ;;  %v581_v3 = vmul.f32 0.5, %v2280_v20 }
 0x1bc   :  { %v1818_v19 = vpop.eup %1817  ;;  %v767_v14 = vadd.f32 1.0, %v1816_v13  ;;  %v646_v22 = vmul.f32 0.70710677, %v2284_v9  ;;  %v504_v16 = vpop.f32.mrb[56].mxu0  ;;  %v582_v61 = vmul.f32 0.5, %v2284_v9 }
 0x1bd   :  { %v768_v25 = vadd.f32 1.0, %v1818_v19  ;;  %1827 = verf.f32 %v645_v15  ;;  %v2290_v26 = vadd.f32 %v504_v16, %v2038_v5  ;;  %v506_v21 = vpop.f32.mrb[57].mxu0  ;;  %1177 = vmatprep.mubr.f32.mxu1 %v830_v17 }
 0x1be   :  { %1829 = verf.f32 %v646_v22  ;;  %v2294_v23 = vadd.f32 %v506_v21, %v2042_v6  ;;  %1178 = vmatmul.mubr.f32.gmra.mrb[46].mxu1 %v829_v24  ;;  %v831_v39 = vmul.f32 %v767_v14, %v575_v27 }
 0x1bf   :  { %v1820_v29 = vpop.eup %1819  ;;  %v647_v30 = vmul.f32 0.70710677, %v2290_v26  ;;  %v832_v32 = vmul.f32 %v768_v25, %v576_v18 }
 0x1c0   :  { %v1822_v34 = vpop.eup %1821  ;;  %v769_v28 = vadd.f32 1.0, %v1820_v29  ;;  %v648_v37 = vmul.f32 0.70710677, %v2294_v23  ;;  %v510_v31 = vpop.f32.mrb[58].mxu0  ;;  %v584_v9 = vmul.f32 0.5, %v2294_v23 }
 0x1c1   :  { %v770_v41 = vadd.f32 1.0, %v1822_v34  ;;  %1831 = verf.f32 %v647_v30  ;;  %v2300_v35 = vadd.f32 %v510_v31, %v2038_v5  ;;  %v512_v36 = vpop.f32.mrb[59].mxu0  ;;  %1183 = vmatprep.mubr.f32.mxu1 %v832_v32 }
 0x1c2   :  { %1833 = verf.f32 %v648_v37  ;;  %v513_v38 = vadd.f32 %v512_v36, %v2042_v6  ;;  %1184 = vmatmul.mubr.f32.gmra.mrb[48].mxu1 %v831_v39  ;;  %v833_v53 = vmul.f32 %v769_v28, %v577_v42 }
 0x1c3   :  { %v1824_v43 = vpop.eup %1823  ;;  %v649_v44 = vmul.f32 0.70710677, %v2300_v35  ;;  %v834_v46 = vmul.f32 %v770_v41, %v578_v33  ;;  %v585_v29 = vmul.f32 0.5, %v2300_v35 }
 0x1c4   :  { %v1826_v48 = vpop.eup %1825  ;;  %v771_v50 = vadd.f32 1.0, %v1824_v43  ;;  %v650_v40 = vmul.f32 0.70710677, %v513_v38  ;;  %v516_v45 = vpop.f32.mrb[60].mxu0  ;;  %v586_v21 = vmul.f32 0.5, %v513_v38 }
 0x1c5   :  { %v772_v55 = vadd.f32 1.0, %v1826_v48  ;;  %1835 = verf.f32 %v649_v44  ;;  %v517_v49 = vadd.f32 %v516_v45, %v2038_v5  ;;  %v518_v51 = vpop.f32.mrb[61].mxu0  ;;  %1189 = vmatprep.mubr.f32.mxu1 %v834_v46  ;;  %v1427_v48 = vld [vmem:[%s2410_s4] sm:$0x3]  ;;  %s1946_s4 = smov [#allocation9]  }
 0x1c6   :  { %1837 = verf.f32 %v650_v40  ;;  %v519_v52 = vadd.f32 %v518_v51, %v2042_v6  ;;  %1190 = vmatmul.mubr.f32.gmra.mrb[50].mxu1 %v833_v53  ;;  %v835_v54 = vmul.f32 %v771_v50, %v579_v56  ;;  %v2321_v50 = vrot.slane %v1427_v48, %v262_v2  ;;  %s1572_s8 = sshll.u32 %s1946_s4, 4  ;;  %s1573_s8 = int_to_ptr.vmem [resolvable:$true] %s1572_s8 }
 0x1c7   :  { %v1828_v57 = vpop.eup %1827  ;;  %v651_v58 = vmul.f32 0.70710677, %v517_v49  ;;  %v836_v60 = vmul.f32 %v772_v55, %v580_v47  ;;  %v587_v31 = vmul.f32 0.5, %v517_v49  ;;  %v2325_v40 = vrot.slane %v1427_v48, %v266_v4  ;;  %s1913_s9 = scalar_lea.vmem %s1573_s8, 8192  ;;  %p1918_p11 = scmp.lt.s32.totalorder %s1573_s8, %s1573_s8 }
 0x1c8   :  { %v1830_v62 = vpop.eup %1829  ;;  %v773_v0 = vadd.f32 1.0, %v1828_v57  ;;  %v652_v59 = vmul.f32 0.70710677, %v519_v52  ;;  %v522_v8 = vpop.f32.mrb[62].mxu0  ;;  %v588_v37 = vmul.f32 0.5, %v519_v52  ;;  %p1914_p10 = scmp.ne.s32.totalorder %s1573_s8, %s1913_s9  ;;  %p1919_p12 = scmp.lt.s32.totalorder %s1913_s9, %s1913_s9 }
 0x1c9   :  { %v774_v10 = vadd.f32 1.0, %v1830_v62  ;;  %1839 = verf.f32 %v651_v58  ;;  %v523_v63 = vadd.f32 %v522_v8, %v2038_v5  ;;  %v524_v11 = vpop.f32.mrb[63].mxu0  ;;  %1195 = vmatprep.mubr.f32.mxu1 %v836_v60  ;;  %v583_v5 = vmul.f32 0.5, %v2290_v26 }
 0x1ca   :  { %1841 = verf.f32 %v652_v59  ;;  %v525_v7 = vadd.f32 %v524_v11, %v2042_v6  ;;  %1196 = vmatmul.mubr.f32.gmra.mrb[52].mxu1 %v835_v54  ;;  %v837_v22 = vmul.f32 %v773_v0, %v581_v3  ;;  %p1920_p13 = por %p1919_p12, %p1918_p11 }
 0x1cb   :  { %v1832_v12 = vpop.eup %1831  ;;  %v653_v13 = vmul.f32 0.70710677, %v523_v63  ;;  %v838_v15 = vmul.f32 %v774_v10, %v582_v61  ;;  %v589_v35 = vmul.f32 0.5, %v523_v63 }
 0x1cc   :  { %v1834_v17 = vpop.eup %1833  ;;  %v775_v19 = vadd.f32 1.0, %v1832_v12  ;;  %v654_v14 = vmul.f32 0.70710677, %v525_v7  ;;  %v590_v38 = vmul.f32 0.5, %v525_v7  ;;  %p1921_p0 = pnand %p1920_p13, %p1914_p10 }
 0x1cd   :  { %v776_v16 = vadd.f32 1.0, %v1834_v17  ;;  %1843 = verf.f32 %v653_v13  ;;  %1201 = vmatprep.mubr.f32.mxu1 %v838_v15 }
 0x1ce   :  { %1845 = verf.f32 %v654_v14  ;;  %1202 = vmatmul.mubr.f32.gmra.mrb[54].mxu1 %v837_v22  ;;  %v839_v25 = vmul.f32 %v775_v19, %v583_v5 }
 0x1cf   :  { %v1836_v20 = vpop.eup %1835  ;;  %v840_v24 = vmul.f32 %v776_v16, %v584_v9 }
 0x1d0   :  { %v1838_v6 = vpop.eup %1837  ;;  %v777_v18 = vadd.f32 1.0, %v1836_v20 }
 0x1d1   :  { %v778_v27 = vadd.f32 1.0, %v1838_v6  ;;  %1207 = vmatprep.mubr.f32.mxu1 %v840_v24 }
 0x1d2   :  { %1208 = vmatmul.mubr.f32.gmra.mrb[56].mxu1 %v839_v25  ;;  %v841_v28 = vmul.f32 %v777_v18, %v585_v29 }
 0x1d3   :  { %v1840_v30 = vpop.eup %1839  ;;  %v842_v23 = vmul.f32 %v778_v27, %v586_v21 }
 0x1d4   :  { %v1842_v32 = vpop.eup %1841  ;;  %v779_v34 = vadd.f32 1.0, %v1840_v30 }
 0x1d5   :  { %v780_v26 = vadd.f32 1.0, %v1842_v32  ;;  %1213 = vmatprep.mubr.f32.mxu1 %v842_v23 }
 0x1d6   :  { %1214 = vmatmul.mubr.f32.gmra.mrb[58].mxu1 %v841_v28  ;;  %v843_v42 = vmul.f32 %v779_v34, %v587_v31 }
 0x1d7   :  { %v1844_v39 = vpop.eup %1843  ;;  %v844_v33 = vmul.f32 %v780_v26, %v588_v37 }
 0x1d8   :  { %v1846_v41 = vpop.eup %1845  ;;  %v781_v36 = vadd.f32 1.0, %v1844_v39 }
 0x1d9   :  { %v782_v43 = vadd.f32 1.0, %v1846_v41  ;;  %1219 = vmatprep.mubr.f32.mxu1 %v844_v33 }
 0x1da   :  { %1220 = vmatmul.mubr.f32.gmra.mrb[60].mxu1 %v843_v42  ;;  %v845_v46 = vmul.f32 %v781_v36, %v589_v35 }
 0x1db   :  { %v846_v44 = vmul.f32 %v782_v43, %v590_v38 }
 0x1dd   :  { %1225 = vmatprep.mubr.f32.mxu1 %v846_v44 }
 0x1de   :  { %1226 = vmatmul.mubr.f32.gmra.mrb[62].mxu1 %v845_v46 }
 0x235   :  { %v1041_v45 = vpop.f32.mrb[0].mxu1 }
 0x236   :  { %v1439_v53 = vadd.f32 %v2321_v50, %v1041_v45  ;;  %v1043_v47 = vpop.f32.mrb[1].mxu1 }
 0x237   :  { %v1440_v55 = vadd.f32 %v2325_v40, %v1043_v47 }
 0x238   :  { %1503 = vst [vmem:[#allocation9] sm:$0xff] %v1439_v53 }
 0x239   :  { %1504 = vst [vmem:[#allocation9 + $0x8] sm:$0xff] %v1440_v55  ;;  %v1047_v49 = vpop.f32.mrb[2].mxu1 }
 0x23a   :  { %v1441_v51 = vadd.f32 %v2321_v50, %v1047_v49  ;;  %v1049_v56 = vpop.f32.mrb[3].mxu1 }
 0x23b   :  { %v1442_v52 = vadd.f32 %v2325_v40, %v1049_v56 }
 0x23c   :  { %1505 = vst [vmem:[#allocation9 + $0x10] sm:$0xff] %v1441_v51 }
 0x23d   :  { %1506 = vst [vmem:[#allocation9 + $0x18] sm:$0xff] %v1442_v52  ;;  %v1053_v2 = vpop.f32.mrb[4].mxu1 }
 0x23e   :  { %v1443_v1 = vadd.f32 %v2321_v50, %v1053_v2  ;;  %v1055_v4 = vpop.f32.mrb[5].mxu1 }
 0x23f   :  { %v1444_v57 = vadd.f32 %v2325_v40, %v1055_v4 }
 0x240   :  { %1507 = vst [vmem:[#allocation9 + $0x20] sm:$0xff] %v1443_v1 }
 0x241   :  { %1508 = vst [vmem:[#allocation9 + $0x28] sm:$0xff] %v1444_v57  ;;  %v1059_v58 = vpop.f32.mrb[6].mxu1 }
 0x242   :  { %v1445_v60 = vadd.f32 %v2321_v50, %v1059_v58  ;;  %v1061_v62 = vpop.f32.mrb[7].mxu1 }
 0x243   :  { %v1446_v0 = vadd.f32 %v2325_v40, %v1061_v62 }
 0x244   :  { %1509 = vst [vmem:[#allocation9 + $0x30] sm:$0xff] %v1445_v60 }
 0x245   :  { %1510 = vst [vmem:[#allocation9 + $0x38] sm:$0xff] %v1446_v0  ;;  %v1065_v59 = vpop.f32.mrb[8].mxu1 }
 0x246   :  { %v1447_v8 = vadd.f32 %v2321_v50, %v1065_v59  ;;  %v1067_v54 = vpop.f32.mrb[9].mxu1 }
 0x247   :  { %v1448_v61 = vadd.f32 %v2325_v40, %v1067_v54 }
 0x248   :  { %1511 = vst [vmem:[#allocation9 + $0x40] sm:$0xff] %v1447_v8 }
 0x249   :  { %1512 = vst [vmem:[#allocation9 + $0x48] sm:$0xff] %v1448_v61  ;;  %v1071_v10 = vpop.f32.mrb[10].mxu1 }
 0x24a   :  { %v1449_v63 = vadd.f32 %v2321_v50, %v1071_v10  ;;  %v1073_v11 = vpop.f32.mrb[11].mxu1 }
 0x24b   :  { %v1450_v3 = vadd.f32 %v2325_v40, %v1073_v11 }
 0x24c   :  { %1513 = vst [vmem:[#allocation9 + $0x50] sm:$0xff] %v1449_v63 }
 0x24d   :  { %1514 = vst [vmem:[#allocation9 + $0x58] sm:$0xff] %v1450_v3  ;;  %v1077_v7 = vpop.f32.mrb[12].mxu1 }
 0x24e   :  { %v1451_v12 = vadd.f32 %v2321_v50, %v1077_v7  ;;  %v1079_v13 = vpop.f32.mrb[13].mxu1 }
 0x24f   :  { %v1452_v15 = vadd.f32 %v2325_v40, %v1079_v13 }
 0x250   :  { %1515 = vst [vmem:[#allocation9 + $0x60] sm:$0xff] %v1451_v12 }
 0x251   :  { %1516 = vst [vmem:[#allocation9 + $0x68] sm:$0xff] %v1452_v15  ;;  %v1083_v17 = vpop.f32.mrb[14].mxu1 }
 0x252   :  { %v1453_v19 = vadd.f32 %v2321_v50, %v1083_v17  ;;  %v1085_v14 = vpop.f32.mrb[15].mxu1 }
 0x253   :  { %v1454_v22 = vadd.f32 %v2325_v40, %v1085_v14 }
 0x254   :  { %1517 = vst [vmem:[#allocation9 + $0x70] sm:$0xff] %v1453_v19 }
 0x255   :  { %1518 = vst [vmem:[#allocation9 + $0x78] sm:$0xff] %v1454_v22  ;;  %v1089_v9 = vpop.f32.mrb[16].mxu1 }
 0x256   :  { %v1455_v16 = vadd.f32 %v2321_v50, %v1089_v9  ;;  %v1091_v5 = vpop.f32.mrb[17].mxu1 }
 0x257   :  { %v1456_v20 = vadd.f32 %v2325_v40, %v1091_v5 }
 0x258   :  { %1519 = vst [vmem:[#allocation9 + $0x80] sm:$0xff] %v1455_v16 }
 0x259   :  { %1520 = vst [vmem:[#allocation9 + $0x88] sm:$0xff] %v1456_v20  ;;  %v1095_v24 = vpop.f32.mrb[18].mxu1 }
 0x25a   :  { %v1457_v6 = vadd.f32 %v2321_v50, %v1095_v24  ;;  %v1097_v18 = vpop.f32.mrb[19].mxu1 }
 0x25b   :  { %v1458_v25 = vadd.f32 %v2325_v40, %v1097_v18 }
 0x25c   :  { %1521 = vst [vmem:[#allocation9 + $0x90] sm:$0xff] %v1457_v6 }
 0x25d   :  { %1522 = vst [vmem:[#allocation9 + $0x98] sm:$0xff] %v1458_v25  ;;  %v1101_v21 = vpop.f32.mrb[20].mxu1 }
 0x25e   :  { %v1459_v27 = vadd.f32 %v2321_v50, %v1101_v21  ;;  %v1103_v29 = vpop.f32.mrb[21].mxu1 }
 0x25f   :  { %v1460_v30 = vadd.f32 %v2325_v40, %v1103_v29 }
 0x260   :  { %1523 = vst [vmem:[#allocation9 + $0xa0] sm:$0xff] %v1459_v27 }
 0x261   :  { %1524 = vst [vmem:[#allocation9 + $0xa8] sm:$0xff] %v1460_v30  ;;  %v1107_v23 = vpop.f32.mrb[22].mxu1 }
 0x262   :  { %v1461_v32 = vadd.f32 %v2321_v50, %v1107_v23  ;;  %v1109_v34 = vpop.f32.mrb[23].mxu1 }
 0x263   :  { %v1462_v28 = vadd.f32 %v2325_v40, %v1109_v34 }
 0x264   :  { %1525 = vst [vmem:[#allocation9 + $0xb0] sm:$0xff] %v1461_v32 }
 0x265   :  { %1526 = vst [vmem:[#allocation9 + $0xb8] sm:$0xff] %v1462_v28  ;;  %v1113_v37 = vpop.f32.mrb[24].mxu1 }
 0x266   :  { %v1463_v26 = vadd.f32 %v2321_v50, %v1113_v37  ;;  %v1115_v31 = vpop.f32.mrb[25].mxu1 }
 0x267   :  { %v1464_v39 = vadd.f32 %v2325_v40, %v1115_v31 }
 0x268   :  { %1527 = vst [vmem:[#allocation9 + $0xc0] sm:$0xff] %v1463_v26 }
 0x269   :  { %1528 = vst [vmem:[#allocation9 + $0xc8] sm:$0xff] %v1464_v39  ;;  %v1119_v33 = vpop.f32.mrb[26].mxu1 }
 0x26a   :  { %v1465_v41 = vadd.f32 %v2321_v50, %v1119_v33  ;;  %v1121_v36 = vpop.f32.mrb[27].mxu1 }
 0x26b   :  { %v1466_v42 = vadd.f32 %v2325_v40, %v1121_v36 }
 0x26c   :  { %1529 = vst [vmem:[#allocation9 + $0xd0] sm:$0xff] %v1465_v41 }
 0x26d   :  { %1530 = vst [vmem:[#allocation9 + $0xd8] sm:$0xff] %v1466_v42  ;;  %v1125_v38 = vpop.f32.mrb[28].mxu1 }
 0x26e   :  { %v1467_v43 = vadd.f32 %v2321_v50, %v1125_v38  ;;  %v1127_v35 = vpop.f32.mrb[29].mxu1 }
 0x26f   :  { %v1468_v44 = vadd.f32 %v2325_v40, %v1127_v35 }
 0x270   :  { %1531 = vst [vmem:[#allocation9 + $0xe0] sm:$0xff] %v1467_v43 }
 0x271   :  { %1532 = vst [vmem:[#allocation9 + $0xe8] sm:$0xff] %v1468_v44  ;;  %v1131_v46 = vpop.f32.mrb[30].mxu1 }
 0x272   :  { %v1469_v48 = vadd.f32 %v2321_v50, %v1131_v46  ;;  %v1133_v45 = vpop.f32.mrb[31].mxu1 }
 0x273   :  { %v1470_v53 = vadd.f32 %v2325_v40, %v1133_v45 }
 0x274   :  { %1533 = vst [vmem:[#allocation9 + $0xf0] sm:$0xff] %v1469_v48 }
 0x275   :  { %1534 = vst [vmem:[#allocation9 + $0xf8] sm:$0xff] %v1470_v53  ;;  %v1137_v47 = vpop.f32.mrb[32].mxu1 }
 0x276   :  { %v1471_v55 = vadd.f32 %v2321_v50, %v1137_v47  ;;  %v1139_v49 = vpop.f32.mrb[33].mxu1 }
 0x277   :  { %v1472_v51 = vadd.f32 %v2325_v40, %v1139_v49 }
 0x278   :  { %1535 = vst [vmem:[#allocation9 + $0x100] sm:$0xff] %v1471_v55 }
 0x279   :  { %1536 = vst [vmem:[#allocation9 + $0x108] sm:$0xff] %v1472_v51  ;;  %v1143_v56 = vpop.f32.mrb[34].mxu1 }
 0x27a   :  { %v1473_v52 = vadd.f32 %v2321_v50, %v1143_v56  ;;  %v1145_v2 = vpop.f32.mrb[35].mxu1 }
 0x27b   :  { %v1474_v1 = vadd.f32 %v2325_v40, %v1145_v2 }
 0x27c   :  { %1537 = vst [vmem:[#allocation9 + $0x110] sm:$0xff] %v1473_v52 }
 0x27d   :  { %1538 = vst [vmem:[#allocation9 + $0x118] sm:$0xff] %v1474_v1  ;;  %v1149_v4 = vpop.f32.mrb[36].mxu1 }
 0x27e   :  { %v1475_v57 = vadd.f32 %v2321_v50, %v1149_v4  ;;  %v1151_v58 = vpop.f32.mrb[37].mxu1 }
 0x27f   :  { %v1476_v60 = vadd.f32 %v2325_v40, %v1151_v58 }
 0x280   :  { %1539 = vst [vmem:[#allocation9 + $0x120] sm:$0xff] %v1475_v57 }
 0x281   :  { %1540 = vst [vmem:[#allocation9 + $0x128] sm:$0xff] %v1476_v60  ;;  %v1155_v62 = vpop.f32.mrb[38].mxu1 }
 0x282   :  { %v1477_v0 = vadd.f32 %v2321_v50, %v1155_v62  ;;  %v1157_v59 = vpop.f32.mrb[39].mxu1 }
 0x283   :  { %v1478_v8 = vadd.f32 %v2325_v40, %v1157_v59 }
 0x284   :  { %1541 = vst [vmem:[#allocation9 + $0x130] sm:$0xff] %v1477_v0 }
 0x285   :  { %1542 = vst [vmem:[#allocation9 + $0x138] sm:$0xff] %v1478_v8  ;;  %v1161_v54 = vpop.f32.mrb[40].mxu1 }
 0x286   :  { %v1479_v61 = vadd.f32 %v2321_v50, %v1161_v54  ;;  %v1163_v10 = vpop.f32.mrb[41].mxu1 }
 0x287   :  { %v1480_v63 = vadd.f32 %v2325_v40, %v1163_v10 }
 0x288   :  { %1543 = vst [vmem:[#allocation9 + $0x140] sm:$0xff] %v1479_v61 }
 0x289   :  { %1544 = vst [vmem:[#allocation9 + $0x148] sm:$0xff] %v1480_v63  ;;  %v1167_v11 = vpop.f32.mrb[42].mxu1 }
 0x28a   :  { %v1481_v3 = vadd.f32 %v2321_v50, %v1167_v11  ;;  %v1169_v7 = vpop.f32.mrb[43].mxu1 }
 0x28b   :  { %v1482_v12 = vadd.f32 %v2325_v40, %v1169_v7 }
 0x28c   :  { %1545 = vst [vmem:[#allocation9 + $0x150] sm:$0xff] %v1481_v3 }
 0x28d   :  { %1546 = vst [vmem:[#allocation9 + $0x158] sm:$0xff] %v1482_v12  ;;  %v1173_v13 = vpop.f32.mrb[44].mxu1 }
 0x28e   :  { %v1483_v15 = vadd.f32 %v2321_v50, %v1173_v13  ;;  %v1175_v17 = vpop.f32.mrb[45].mxu1 }
 0x28f   :  { %v1484_v19 = vadd.f32 %v2325_v40, %v1175_v17 }
 0x290   :  { %1547 = vst [vmem:[#allocation9 + $0x160] sm:$0xff] %v1483_v15 }
 0x291   :  { %1548 = vst [vmem:[#allocation9 + $0x168] sm:$0xff] %v1484_v19  ;;  %v1179_v14 = vpop.f32.mrb[46].mxu1 }
 0x292   :  { %v1485_v22 = vadd.f32 %v2321_v50, %v1179_v14  ;;  %v1181_v9 = vpop.f32.mrb[47].mxu1 }
 0x293   :  { %v1486_v16 = vadd.f32 %v2325_v40, %v1181_v9 }
 0x294   :  { %1549 = vst [vmem:[#allocation9 + $0x170] sm:$0xff] %v1485_v22 }
 0x295   :  { %1550 = vst [vmem:[#allocation9 + $0x178] sm:$0xff] %v1486_v16  ;;  %v1185_v5 = vpop.f32.mrb[48].mxu1 }
 0x296   :  { %v1487_v20 = vadd.f32 %v2321_v50, %v1185_v5  ;;  %v1187_v24 = vpop.f32.mrb[49].mxu1 }
 0x297   :  { %v1488_v6 = vadd.f32 %v2325_v40, %v1187_v24 }
 0x298   :  { %1551 = vst [vmem:[#allocation9 + $0x180] sm:$0xff] %v1487_v20 }
 0x299   :  { %1552 = vst [vmem:[#allocation9 + $0x188] sm:$0xff] %v1488_v6  ;;  %v1191_v18 = vpop.f32.mrb[50].mxu1 }
 0x29a   :  { %v1489_v25 = vadd.f32 %v2321_v50, %v1191_v18  ;;  %v1193_v21 = vpop.f32.mrb[51].mxu1 }
 0x29b   :  { %v1490_v27 = vadd.f32 %v2325_v40, %v1193_v21 }
 0x29c   :  { %1553 = vst [vmem:[#allocation9 + $0x190] sm:$0xff] %v1489_v25 }
 0x29d   :  { %1554 = vst [vmem:[#allocation9 + $0x198] sm:$0xff] %v1490_v27  ;;  %v1197_v29 = vpop.f32.mrb[52].mxu1 }
 0x29e   :  { %v1491_v30 = vadd.f32 %v2321_v50, %v1197_v29  ;;  %v1199_v23 = vpop.f32.mrb[53].mxu1 }
 0x29f   :  { %v1492_v32 = vadd.f32 %v2325_v40, %v1199_v23 }
 0x2a0   :  { %1555 = vst [vmem:[#allocation9 + $0x1a0] sm:$0xff] %v1491_v30 }
 0x2a1   :  { %1556 = vst [vmem:[#allocation9 + $0x1a8] sm:$0xff] %v1492_v32  ;;  %v1203_v34 = vpop.f32.mrb[54].mxu1 }
 0x2a2   :  { %v1493_v28 = vadd.f32 %v2321_v50, %v1203_v34  ;;  %v1205_v37 = vpop.f32.mrb[55].mxu1 }
 0x2a3   :  { %v1494_v26 = vadd.f32 %v2325_v40, %v1205_v37 }
 0x2a4   :  { %1557 = vst [vmem:[#allocation9 + $0x1b0] sm:$0xff] %v1493_v28 }
 0x2a5   :  { %1558 = vst [vmem:[#allocation9 + $0x1b8] sm:$0xff] %v1494_v26  ;;  %v1209_v31 = vpop.f32.mrb[56].mxu1 }
 0x2a6   :  { %v1495_v39 = vadd.f32 %v2321_v50, %v1209_v31  ;;  %v1211_v33 = vpop.f32.mrb[57].mxu1 }
 0x2a7   :  { %v1496_v41 = vadd.f32 %v2325_v40, %v1211_v33 }
 0x2a8   :  { %1559 = vst [vmem:[#allocation9 + $0x1c0] sm:$0xff] %v1495_v39 }
 0x2a9   :  { %1560 = vst [vmem:[#allocation9 + $0x1c8] sm:$0xff] %v1496_v41  ;;  %v1215_v36 = vpop.f32.mrb[58].mxu1 }
 0x2aa   :  { %v1497_v42 = vadd.f32 %v2321_v50, %v1215_v36  ;;  %v1217_v38 = vpop.f32.mrb[59].mxu1 }
 0x2ab   :  { %v1498_v43 = vadd.f32 %v2325_v40, %v1217_v38 }
 0x2ac   :  { %1561 = vst [vmem:[#allocation9 + $0x1d0] sm:$0xff] %v1497_v42 }
 0x2ad   :  { %1562 = vst [vmem:[#allocation9 + $0x1d8] sm:$0xff] %v1498_v43  ;;  %v1221_v35 = vpop.f32.mrb[60].mxu1 }
 0x2ae   :  { %v1499_v44 = vadd.f32 %v2321_v50, %v1221_v35  ;;  %v1223_v46 = vpop.f32.mrb[61].mxu1 }
 0x2af   :  { %v1500_v48 = vadd.f32 %v2325_v40, %v1223_v46 }
 0x2b0   :  { %1563 = vst [vmem:[#allocation9 + $0x1e0] sm:$0xff] %v1499_v44 }
 0x2b1   :  { %1564 = vst [vmem:[#allocation9 + $0x1e8] sm:$0xff] %v1500_v48  ;;  %v1227_v45 = vpop.f32.mrb[62].mxu1 }
 0x2b2   :  { %v1501_v53 = vadd.f32 %v2321_v50, %v1227_v45  ;;  %v1229_v47 = vpop.f32.mrb[63].mxu1 }
 0x2b3   :  { %v1502_v55 = vadd.f32 %v2325_v40, %v1229_v47 }
 0x2b4   :  { %1565 = vst [vmem:[#allocation9 + $0x1f0] sm:$0xff] %v1501_v53 }
 0x2b5   :  { %1566 = vst [vmem:[#allocation9 + $0x1f8] sm:$0xff] %v1502_v55 }
 0x2b6   :  { %1924 = shalt.err (!%p1921_p0)
}
 0x2b7   :  { %s1925_s12 = scalar_lea.hbm %s2411_s5, 8192 }
 0x2b8   :  { %p1926_p1 = scmp.ne.s32.totalorder %s2411_s5, %s1925_s12  ;;  %p1929_p2 = scmp.lt.u32.totalorder %s1925_s12, %s2411_s5 }
 0x2ba   :  { %p1931_p3 = pnand %p1929_p2, %p1926_p1 }
 0x2bc   :  { %1934 = shalt.err (!%p1931_p3)
}
 0x2bd   :  { %1578 = dma.vmem_to_hbm [thread:$0]  %s1573_s8, 8192, %s2411_s5, [#allocation5], %s1943_s30, %s1943_s30, %s1944_s6  }
 0x2be   :  { %1939 = dma.done.wait [#allocation5], 8192  }
 0x2bf   :  { %1940 = vsyncadd [#allocation5], 4294959104 }
 0x2c0   :  { %1582 = vsyncpa [#allocation4], 1 }
 0x2c1   :  { %1583 = vsyncpa [#allocation7], 1 }
 0x2c2   :  { %1584 = vsyncpa [#allocation5], 1 }

</bundles_post_ra>
